<compile_context>
chip_gen: v6e
topology: v6e:2x2x1
jax: 0.10.0
libtpu: 0.0.40
codegen_flags: <defaults>
</compile_context>

<pallas_src>
import jax
import jax.numpy as jnp
from jax.experimental import pallas as pl
from jax.experimental.pallas import tpu as pltpu

MANIFOLD_DIM = 4
HIDDEN = 128
BATCH = 512          # example batch: one (512, d) tile -> grid=(1,)
MAX_TILE_B = 512     # row tile for large batches (multiple of 16)


def _grad_hnn_kernel(x_ref, w1_ref, bh_ref, wh_ref, w4_ref, b4_ref, o_ref):
    """Fused 4-layer MLP on one (tile_b, d) batch tile, natural layout.

    x_ref : (tile_b, d)   f32   activations (batch on sublanes)
    w1_ref: (d, H)        bf16  layer-1 weight, pre-transposed (in, out)
    bh_ref: (3, H)        f32   biases of layers 1..3 (stacked)
    wh_ref: (2, H, H)     bf16  layer-2/3 weights, pre-transposed (stacked)
    w4_ref: (H, d)        bf16  layer-4 weight, pre-transposed
    b4_ref: (1, d)        f32   layer-4 bias
    o_ref : (tile_b, d)   f32
    """
    half = x_ref.shape[0] // 2

    w1 = w1_ref[...]
    w2 = wh_ref[0]
    w3 = wh_ref[1]
    w4 = w4_ref[...]
    b1 = bh_ref[0:1, :]
    b2 = bh_ref[1:2, :]
    b3 = bh_ref[2:3, :]
    b4 = b4_ref[...]

    def layer(a, w, b):
        # MXU matmul: bf16 operands, f32 accumulation.  Bias/ReLU on the VPU in
        # f32 (v5e has no bf16 VALU), then cast back to bf16 for the next MXU op.
        y = jnp.dot(a, w, preferred_element_type=jnp.float32) + b
        return jnp.maximum(y, 0.0).astype(jnp.bfloat16)

    # Two independent batch halves: the serial 4-matmul chain of one half can
    # overlap the bias/ReLU/cast epilogue of the other (MXU ILP).
    h = [x_ref[pl.ds(i * half, half), :].astype(jnp.bfloat16) for i in range(2)]
    h = [layer(a, w1, b1) for a in h]
    h = [layer(a, w2, b2) for a in h]
    h = [layer(a, w3, b3) for a in h]
    for i in range(2):
        y = jnp.dot(h[i], w4, preferred_element_type=jnp.float32) + b4
        o_ref[pl.ds(i * half, half), :] = y.astype(o_ref.dtype)


def init_params(key, manifold_dim=MANIFOLD_DIM, hidden=HIDDEN):
    """PyTorch default Linear init: U(-1/sqrt(fan_in), +1/sqrt(fan_in)).
    Weights stored PyTorch-style (out, in)."""
    dims = [(manifold_dim, hidden), (hidden, hidden), (hidden, hidden),
            (hidden, manifold_dim)]
    params = {}
    keys = jax.random.split(key, 2 * len(dims))
    for idx, (fan_in, fan_out) in enumerate(dims):
        bound = 1.0 / jnp.sqrt(fan_in)
        wk, bk = keys[2 * idx], keys[2 * idx + 1]
        params[f"w{idx + 1}"] = jax.random.uniform(
            wk, (fan_out, fan_in), jnp.float32, -bound, bound)
        params[f"b{idx + 1}"] = jax.random.uniform(
            bk, (fan_out,), jnp.float32, -bound, bound)
    return params


def prepare_params(params):
    """One-time operand prep, hoisted out of the per-call path:
    pre-transpose weights to (in, out), cast to bf16 for the MXU, and pack the
    hidden weights / biases to reduce operand & DMA-descriptor count."""
    return {
        "w1t": params["w1"].T.astype(jnp.bfloat16),                              # (d, H)
        "bh": jnp.stack([params["b1"], params["b2"], params["b3"]]).astype(jnp.float32),  # (3, H)
        "wh": jnp.stack([params["w2"].T, params["w3"].T]).astype(jnp.bfloat16),   # (2, H, H)
        "w4t": params["w4"].T.astype(jnp.bfloat16),                               # (H, d)
        "b4": params["b4"].reshape(1, -1).astype(jnp.float32),                    # (1, d)
    }


@jax.jit
def grad_hnn_forward(u, prepared):
    """u: (B, manifold_dim) float32.  prepared: output of prepare_params()."""
    B, D = u.shape

    # Collapse the grid when the whole batch fits in one tile (B=512 -> grid=(1,));
    # otherwise tile at MAX_TILE_B rows.  tile_b must be a multiple of 16 so the
    # kernel's two halves stay sublane-aligned.
    if B <= 1024 and B % 16 == 0:
        tile_b = B
    else:
        tile_b = MAX_TILE_B
    num_tiles = pl.cdiv(B, tile_b)
    bp = num_tiles * tile_b
    x = u if bp == B else jnp.pad(u, ((0, bp - B), (0, 0)))

    def resident(arr):
        # Grid-invariant block: weights/biases stay VMEM-resident across steps.
        nd = arr.ndim
        return pl.BlockSpec(arr.shape, lambda i, _nd=nd: (0,) * _nd)

    out = pl.pallas_call(
        _grad_hnn_kernel,
        out_shape=jax.ShapeDtypeStruct((bp, D), u.dtype),
        grid_spec=pltpu.PrefetchScalarGridSpec(
            num_scalar_prefetch=0,
            grid=(num_tiles,),
            in_specs=[
                pl.BlockSpec((tile_b, D), lambda i: (i, 0)),   # activations
                resident(prepared["w1t"]),
                resident(prepared["bh"]),
                resident(prepared["wh"]),
                resident(prepared["w4t"]),
                resident(prepared["b4"]),
            ],
            out_specs=pl.BlockSpec((tile_b, D), lambda i: (i, 0)),
        ),
        compiler_params=pltpu.CompilerParams(
            # Don't megacore-shard a 1-2 step grid (pure overhead on v7x);
            # only mark the batch axis parallel with >= 4 steps of real work.
            dimension_semantics=(("parallel",) if num_tiles >= 4 else ("arbitrary",)),
        ),
    )(x, prepared["w1t"], prepared["bh"], prepared["wh"],
      prepared["w4t"], prepared["b4"])

    return out if bp == B else out[:B]


def _reference_forward_bf16(u, params):
    """Mirror of the kernel's precision (bf16 matmul operands, f32 accumulation,
    f32 bias/ReLU).  Validates the kernel tightly."""
    def layer(x, w, b):
        return jnp.dot(x.astype(jnp.bfloat16), w.astype(jnp.bfloat16).T,
                       preferred_element_type=jnp.float32) + b
    h = jnp.maximum(layer(u, params["w1"], params["b1"]), 0.0)
    h = jnp.maximum(layer(h, params["w2"], params["b2"]), 0.0)
    h = jnp.maximum(layer(h, params["w3"], params["b3"]), 0.0)
    return layer(h, params["w4"], params["b4"])


def _reference_forward_f32(u, params):
    """Full-f32 PyTorch semantics (x @ W.T + b with ReLU between layers);
    checked with loose tolerance since the kernel uses bf16 MXU operands."""
    def layer(x, w, b):
        return jnp.dot(x, w.T, precision=jax.lax.Precision.HIGHEST) + b
    h = jnp.maximum(layer(u, params["w1"], params["b1"]), 0.0)
    h = jnp.maximum(layer(h, params["w2"], params["b2"]), 0.0)
    h = jnp.maximum(layer(h, params["w3"], params["b3"]), 0.0)
    return layer(h, params["w4"], params["b4"])


if __name__ == "__main__":
    key = jax.random.PRNGKey(0)
    pkey, ukey = jax.random.split(key)

    params = init_params(pkey)
    prepared = prepare_params(params)
    u = jax.random.normal(ukey, (BATCH, MANIFOLD_DIM), jnp.float32)

    out = jax.block_until_ready(grad_hnn_forward(u, prepared))
    assert out.shape == (BATCH, MANIFOLD_DIM)

    ref_bf16 = _reference_forward_bf16(u, params)
    ref_f32 = _reference_forward_f32(u, params)
    assert jnp.allclose(out, ref_bf16, atol=2e-3, rtol=2e-3), \
        "mismatch vs bf16-precision reference"
    assert jnp.allclose(out, ref_f32, atol=5e-2, rtol=5e-2), \
        "mismatch vs f32 PyTorch reference"

    print("KERNEL_OK")
</pallas_src>

<mosaic_0001>
module attributes {stable_mosaic.version = 11 : i64} {
  func.func @_grad_hnn_kernel(%arg0: i32, %arg1: memref<512x4xf32, #tpu.memory_space<vmem>>, %arg2: memref<4x128xbf16, #tpu.memory_space<vmem>>, %arg3: memref<3x128xf32, #tpu.memory_space<vmem>>, %arg4: memref<2x128x128xbf16, #tpu.memory_space<vmem>>, %arg5: memref<128x4xbf16, #tpu.memory_space<vmem>>, %arg6: memref<1x4xf32, #tpu.memory_space<vmem>>, %arg7: memref<512x4xf32, #tpu.memory_space<vmem>>) attributes {dimension_semantics = [#tpu.dimension_semantics<arbitrary>], iteration_bounds = array<i64: 1>, scalar_prefetch = 0 : i64, scratch_operands = 0 : i64, tpu.core_type = #tpu.core_type<tc>, window_params = [{transform_indices = @transform_0, window_bounds = array<i64: 512, 4>}, {pipeline_mode = #tpu.pipeline_mode<synchronous>, transform_indices = @transform_1, window_bounds = array<i64: 4, 128>}, {pipeline_mode = #tpu.pipeline_mode<synchronous>, transform_indices = @transform_2, window_bounds = array<i64: 3, 128>}, {pipeline_mode = #tpu.pipeline_mode<synchronous>, transform_indices = @transform_3, window_bounds = array<i64: 2, 128, 128>}, {pipeline_mode = #tpu.pipeline_mode<synchronous>, transform_indices = @transform_4, window_bounds = array<i64: 128, 4>}, {pipeline_mode = #tpu.pipeline_mode<synchronous>, transform_indices = @transform_5, window_bounds = array<i64: 1, 4>}, {transform_indices = @transform_6, window_bounds = array<i64: 512, 4>}]} {
    %c0 = arith.constant 0 : index
    %c0_0 = arith.constant 0 : index
    %0 = vector.load %arg2[%c0, %c0_0] : memref<4x128xbf16, #tpu.memory_space<vmem>>, vector<4x128xbf16>
    %c0_1 = arith.constant 0 : index
    %c0_2 = arith.constant 0 : index
    %c0_3 = arith.constant 0 : index
    %1 = vector.load %arg4[%c0_1, %c0_2, %c0_3] : memref<2x128x128xbf16, #tpu.memory_space<vmem>>, vector<1x128x128xbf16>
    %2 = vector.shape_cast %1 : vector<1x128x128xbf16> to vector<128x128xbf16>
    %c1 = arith.constant 1 : index
    %c0_4 = arith.constant 0 : index
    %c0_5 = arith.constant 0 : index
    %3 = vector.load %arg4[%c1, %c0_4, %c0_5] : memref<2x128x128xbf16, #tpu.memory_space<vmem>>, vector<1x128x128xbf16>
    %4 = vector.shape_cast %3 : vector<1x128x128xbf16> to vector<128x128xbf16>
    %c0_6 = arith.constant 0 : index
    %c0_7 = arith.constant 0 : index
    %5 = vector.load %arg5[%c0_6, %c0_7] : memref<128x4xbf16, #tpu.memory_space<vmem>>, vector<128x4xbf16>
    %c0_8 = arith.constant 0 : index
    %c0_9 = arith.constant 0 : index
    %6 = vector.load %arg3[%c0_8, %c0_9] : memref<3x128xf32, #tpu.memory_space<vmem>>, vector<1x128xf32>
    %c1_10 = arith.constant 1 : index
    %c0_11 = arith.constant 0 : index
    %7 = vector.load %arg3[%c1_10, %c0_11] : memref<3x128xf32, #tpu.memory_space<vmem>>, vector<1x128xf32>
    %c2 = arith.constant 2 : index
    %c0_12 = arith.constant 0 : index
    %8 = vector.load %arg3[%c2, %c0_12] : memref<3x128xf32, #tpu.memory_space<vmem>>, vector<1x128xf32>
    %c0_13 = arith.constant 0 : index
    %c0_14 = arith.constant 0 : index
    %9 = vector.load %arg6[%c0_13, %c0_14] : memref<1x4xf32, #tpu.memory_space<vmem>>, vector<1x4xf32>
    %c0_15 = arith.constant 0 : index
    %c0_16 = arith.constant 0 : index
    %10 = vector.load %arg1[%c0_15, %c0_16] : memref<512x4xf32, #tpu.memory_space<vmem>>, vector<256x4xf32>
    %11 = arith.truncf %10 : vector<256x4xf32> to vector<256x4xbf16>
    %c256 = arith.constant 256 : index
    %c0_17 = arith.constant 0 : index
    %12 = vector.load %arg1[%c256, %c0_17] : memref<512x4xf32, #tpu.memory_space<vmem>>, vector<256x4xf32>
    %13 = arith.truncf %12 : vector<256x4xf32> to vector<256x4xbf16>
    %cst = arith.constant dense<0.000000e+00> : vector<256x128xf32>
    %14 = tpu.matmul %11, %0, %cst {dimension_numbers = #tpu.dot_dimension_numbers<[1], [0], [0], [1], [0, 0, 1, 1], [], []>} : vector<256x4xbf16>, vector<4x128xbf16>, vector<256x128xf32> -> vector<256x128xf32>
    %15 = vector.broadcast %6 : vector<1x128xf32> to vector<256x128xf32>
    %16 = arith.addf %14, %15 : vector<256x128xf32>
    %cst_18 = arith.constant 0.000000e+00 : f32
    %17 = vector.broadcast %cst_18 : f32 to vector<256x128xf32>
    %18 = arith.maximumf %16, %17 : vector<256x128xf32>
    %19 = arith.truncf %18 : vector<256x128xf32> to vector<256x128xbf16>
    %cst_19 = arith.constant dense<0.000000e+00> : vector<256x128xf32>
    %20 = tpu.matmul %13, %0, %cst_19 {dimension_numbers = #tpu.dot_dimension_numbers<[1], [0], [0], [1], [0, 0, 1, 1], [], []>} : vector<256x4xbf16>, vector<4x128xbf16>, vector<256x128xf32> -> vector<256x128xf32>
    %21 = vector.broadcast %6 : vector<1x128xf32> to vector<256x128xf32>
    %22 = arith.addf %20, %21 : vector<256x128xf32>
    %cst_20 = arith.constant 0.000000e+00 : f32
    %23 = vector.broadcast %cst_20 : f32 to vector<256x128xf32>
    %24 = arith.maximumf %22, %23 : vector<256x128xf32>
    %25 = arith.truncf %24 : vector<256x128xf32> to vector<256x128xbf16>
    %cst_21 = arith.constant dense<0.000000e+00> : vector<256x128xf32>
    %26 = tpu.matmul %19, %2, %cst_21 {dimension_numbers = #tpu.dot_dimension_numbers<[1], [0], [0], [1], [0, 0, 1, 1], [], []>} : vector<256x128xbf16>, vector<128x128xbf16>, vector<256x128xf32> -> vector<256x128xf32>
    %27 = vector.broadcast %7 : vector<1x128xf32> to vector<256x128xf32>
    %28 = arith.addf %26, %27 : vector<256x128xf32>
    %cst_22 = arith.constant 0.000000e+00 : f32
    %29 = vector.broadcast %cst_22 : f32 to vector<256x128xf32>
    %30 = arith.maximumf %28, %29 : vector<256x128xf32>
    %31 = arith.truncf %30 : vector<256x128xf32> to vector<256x128xbf16>
    %cst_23 = arith.constant dense<0.000000e+00> : vector<256x128xf32>
    %32 = tpu.matmul %25, %2, %cst_23 {dimension_numbers = #tpu.dot_dimension_numbers<[1], [0], [0], [1], [0, 0, 1, 1], [], []>} : vector<256x128xbf16>, vector<128x128xbf16>, vector<256x128xf32> -> vector<256x128xf32>
    %33 = vector.broadcast %7 : vector<1x128xf32> to vector<256x128xf32>
    %34 = arith.addf %32, %33 : vector<256x128xf32>
    %cst_24 = arith.constant 0.000000e+00 : f32
    %35 = vector.broadcast %cst_24 : f32 to vector<256x128xf32>
    %36 = arith.maximumf %34, %35 : vector<256x128xf32>
    %37 = arith.truncf %36 : vector<256x128xf32> to vector<256x128xbf16>
    %cst_25 = arith.constant dense<0.000000e+00> : vector<256x128xf32>
    %38 = tpu.matmul %31, %4, %cst_25 {dimension_numbers = #tpu.dot_dimension_numbers<[1], [0], [0], [1], [0, 0, 1, 1], [], []>} : vector<256x128xbf16>, vector<128x128xbf16>, vector<256x128xf32> -> vector<256x128xf32>
    %39 = vector.broadcast %8 : vector<1x128xf32> to vector<256x128xf32>
    %40 = arith.addf %38, %39 : vector<256x128xf32>
    %cst_26 = arith.constant 0.000000e+00 : f32
    %41 = vector.broadcast %cst_26 : f32 to vector<256x128xf32>
    %42 = arith.maximumf %40, %41 : vector<256x128xf32>
    %43 = arith.truncf %42 : vector<256x128xf32> to vector<256x128xbf16>
    %cst_27 = arith.constant dense<0.000000e+00> : vector<256x128xf32>
    %44 = tpu.matmul %37, %4, %cst_27 {dimension_numbers = #tpu.dot_dimension_numbers<[1], [0], [0], [1], [0, 0, 1, 1], [], []>} : vector<256x128xbf16>, vector<128x128xbf16>, vector<256x128xf32> -> vector<256x128xf32>
    %45 = vector.broadcast %8 : vector<1x128xf32> to vector<256x128xf32>
    %46 = arith.addf %44, %45 : vector<256x128xf32>
    %cst_28 = arith.constant 0.000000e+00 : f32
    %47 = vector.broadcast %cst_28 : f32 to vector<256x128xf32>
    %48 = arith.maximumf %46, %47 : vector<256x128xf32>
    %49 = arith.truncf %48 : vector<256x128xf32> to vector<256x128xbf16>
    %cst_29 = arith.constant dense<0.000000e+00> : vector<256x4xf32>
    %50 = tpu.matmul %43, %5, %cst_29 {dimension_numbers = #tpu.dot_dimension_numbers<[1], [0], [0], [1], [0, 0, 1, 1], [], []>} : vector<256x128xbf16>, vector<128x4xbf16>, vector<256x4xf32> -> vector<256x4xf32>
    %51 = vector.broadcast %9 : vector<1x4xf32> to vector<256x4xf32>
    %52 = arith.addf %50, %51 : vector<256x4xf32>
    %c0_30 = arith.constant 0 : index
    %c0_31 = arith.constant 0 : index
    %53 = vector.load %arg7[%c0_30, %c0_31] : memref<512x4xf32, #tpu.memory_space<vmem>>, vector<256x4xf32>
    tpu.vector_store %arg7[%c0_30, %c0_31], %52 {strides = array<i32>} : memref<512x4xf32, #tpu.memory_space<vmem>>, vector<256x4xf32>,
    %cst_32 = arith.constant dense<0.000000e+00> : vector<256x4xf32>
    %54 = tpu.matmul %49, %5, %cst_32 {dimension_numbers = #tpu.dot_dimension_numbers<[1], [0], [0], [1], [0, 0, 1, 1], [], []>} : vector<256x128xbf16>, vector<128x4xbf16>, vector<256x4xf32> -> vector<256x4xf32>
    %55 = vector.broadcast %9 : vector<1x4xf32> to vector<256x4xf32>
    %56 = arith.addf %54, %55 : vector<256x4xf32>
    %c256_33 = arith.constant 256 : index
    %c0_34 = arith.constant 0 : index
    %57 = vector.load %arg7[%c256_33, %c0_34] : memref<512x4xf32, #tpu.memory_space<vmem>>, vector<256x4xf32>
    tpu.vector_store %arg7[%c256_33, %c0_34], %56 {strides = array<i32>} : memref<512x4xf32, #tpu.memory_space<vmem>>, vector<256x4xf32>,
    return
  }
  func.func @transform_0(%arg0: i32) -> (i32, i32) {
    %c0_i32 = arith.constant 0 : i32
    %c0_i32_0 = arith.constant 0 : i32
    return %arg0, %c0_i32 : i32, i32
  }
  func.func @transform_1(%arg0: i32) -> (i32, i32) {
    %c0_i32 = arith.constant 0 : i32
    %c0_i32_0 = arith.constant 0 : i32
    %c0_i32_1 = arith.constant 0 : i32
    return %c0_i32, %c0_i32_0 : i32, i32
  }
  func.func @transform_2(%arg0: i32) -> (i32, i32) {
    %c0_i32 = arith.constant 0 : i32
    %c0_i32_0 = arith.constant 0 : i32
    %c0_i32_1 = arith.constant 0 : i32
    return %c0_i32, %c0_i32_0 : i32, i32
  }
  func.func @transform_3(%arg0: i32) -> (i32, i32, i32) {
    %c0_i32 = arith.constant 0 : i32
    %c0_i32_0 = arith.constant 0 : i32
    %c0_i32_1 = arith.constant 0 : i32
    %c0_i32_2 = arith.constant 0 : i32
    return %c0_i32, %c0_i32_0, %c0_i32_1 : i32, i32, i32
  }
  func.func @transform_4(%arg0: i32) -> (i32, i32) {
    %c0_i32 = arith.constant 0 : i32
    %c0_i32_0 = arith.constant 0 : i32
    %c0_i32_1 = arith.constant 0 : i32
    return %c0_i32, %c0_i32_0 : i32, i32
  }
  func.func @transform_5(%arg0: i32) -> (i32, i32) {
    %c0_i32 = arith.constant 0 : i32
    %c0_i32_0 = arith.constant 0 : i32
    %c0_i32_1 = arith.constant 0 : i32
    return %c0_i32, %c0_i32_0 : i32, i32
  }
  func.func @transform_6(%arg0: i32) -> (i32, i32) {
    %c0_i32 = arith.constant 0 : i32
    %c0_i32_0 = arith.constant 0 : i32
    return %arg0, %c0_i32 : i32, i32
  }
}

</mosaic_0001>

<bundles_post_ra>
// kernel: grad_hnn_forward.1
= control target key start
LH: loop header
LB: loop body
LE: loop exit
PB: predicated region body
PF: predicated region fallthrough
CT: control target
= control target key end

     0   :  { %vm227_vm0 = vcmask 1041408   ;;  %vm178_vm1 = vcmask 31744   ;;  %s3583_s1 = inlined_call_operand.vmem [shape: bf16[4,128], index: 1, kind: input, shape index: {}]   ;;  %s3584_s0 = inlined_call_operand.vmem [shape: f32[512,4], index: 0, kind: input, shape index: {}]   ;;  %s3585_s3 = inlined_call_operand.vmem [shape: bf16[2,128,128], index: 3, kind: input, shape index: {}]   ;;  %s3586_s2 = inlined_call_operand.vmem [shape: f32[3,128], index: 2, kind: input, shape index: {}]   ;;  %s3587_s4 = inlined_call_operand.vmem [shape: bf16[128,4], index: 4, kind: input, shape index: {}]   ;;  %s3588_s5 = inlined_call_operand.vmem [shape: f32[1,4], index: 5, kind: input, shape index: {}]   ;;  %s3589_s6 = inlined_call_operand.vmem [shape: f32[512,4], index: 6, kind: output, shape index: {}]  }
   0x1   :  { %v24_v0 = vld [vmem:[%s3583_s1] sm:$0x3]  ;;  %v79_v2 = vld [vmem:[%s3584_s0 + $0x8] sm:$0xff]  ;;  %v80_v7 = vld [vmem:[%s3584_s0 + $0x10] sm:$0xff] }
   0x2   :  { %v78_v1 = vld [vmem:[%s3584_s0] sm:$0xff]  ;;  %2691 = vmatprep.subr.msk.bf16.mxu0 %vm227_vm0, %v24_v0  ;;  %2692 = vmatprep.subr.msk.bf16.mxu1 %vm227_vm0, %v24_v0  ;;  %v229_v3 = vsel %vm227_vm0, %v24_v0, 0  ;;  %v127_v6 = vld [vmem:[%s3584_s0 + $0x108] sm:$0xff]  ;;  %v81_v9 = vld [vmem:[%s3584_s0 + $0x18] sm:$0xff] }
   0x3   :  { %v110_v4 = vpack.c.bf16 %v79_v2, %v78_v1  ;;  %v126_v5 = vld [vmem:[%s3584_s0 + $0x100] sm:$0xff]  ;;  %2336 = vmatpush3.bf16.msra.mxu0 %v229_v3  ;;  %2370 = vmatpush3.bf16.msra.mxu1 %v229_v3  ;;  %v128_v10 = vld [vmem:[%s3584_s0 + $0x110] sm:$0xff]  ;;  %v129_v11 = vld [vmem:[%s3584_s0 + $0x118] sm:$0xff]  ;;  %v111_v12 = vpack.c.bf16 %v81_v9, %v80_v7 }
   0x4   :  { %v158_v8 = vpack.c.bf16 %v127_v6, %v126_v5  ;;  %v159_v13 = vpack.c.bf16 %v129_v11, %v128_v10  ;;  %v82_v14 = vld [vmem:[%s3584_s0 + $0x20] sm:$0xff]  ;;  %v83_v15 = vld [vmem:[%s3584_s0 + $0x28] sm:$0xff]  ;;  %v84_v20 = vld [vmem:[%s3584_s0 + $0x30] sm:$0xff] }
   0x5   :  { %2337 = vmatprep.mubr.msk.bf16.mxu0 %vm178_vm1, %v110_v4  ;;  %v130_v16 = vld [vmem:[%s3584_s0 + $0x120] sm:$0xff]  ;;  %v112_v17 = vpack.c.bf16 %v83_v15, %v82_v14  ;;  %v131_v18 = vld [vmem:[%s3584_s0 + $0x128] sm:$0xff]  ;;  %v85_v21 = vld [vmem:[%s3584_s0 + $0x38] sm:$0xff] }
   0x6   :  { %2371 = vmatprep.mubr.msk.bf16.mxu1 %vm178_vm1, %v158_v8  ;;  %2338 = vmatmul.mubr.msk.bf16.vlgmr.msra.gmra.mxu0 %vm178_vm1, %v111_v12  ;;  %v160_v19 = vpack.c.bf16 %v131_v18, %v130_v16  ;;  %v132_v22 = vld [vmem:[%s3584_s0 + $0x130] sm:$0xff]  ;;  %v133_v23 = vld [vmem:[%s3584_s0 + $0x138] sm:$0xff]  ;;  %v86_v24 = vld [vmem:[%s3584_s0 + $0x40] sm:$0xff]  ;;  %v113_v28 = vpack.c.bf16 %v85_v21, %v84_v20 }
   0x7   :  { %2372 = vmatmul.mubr.msk.bf16.vlgmr.msra.gmra.mxu1 %vm178_vm1, %v159_v13  ;;  %2341 = vmatprep.mubr.msk.bf16.mxu0 %vm178_vm1, %v112_v17  ;;  %v87_v25 = vld [vmem:[%s3584_s0 + $0x48] sm:$0xff]  ;;  %v134_v26 = vld [vmem:[%s3584_s0 + $0x140] sm:$0xff]  ;;  %v161_v29 = vpack.c.bf16 %v133_v23, %v132_v22  ;;  %v88_v32 = vld [vmem:[%s3584_s0 + $0x50] sm:$0xff] }
   0x8   :  { %2375 = vmatprep.mubr.msk.bf16.mxu1 %vm178_vm1, %v160_v19  ;;  %v135_v27 = vld [vmem:[%s3584_s0 + $0x148] sm:$0xff]  ;;  %v114_v30 = vpack.c.bf16 %v87_v25, %v86_v24  ;;  %v89_v33 = vld [vmem:[%s3584_s0 + $0x58] sm:$0xff]  ;;  %v136_v34 = vld [vmem:[%s3584_s0 + $0x150] sm:$0xff] }
   0x9   :  { %v162_v31 = vpack.c.bf16 %v135_v27, %v134_v26  ;;  %v137_v35 = vld [vmem:[%s3584_s0 + $0x158] sm:$0xff]  ;;  %v90_v36 = vld [vmem:[%s3584_s0 + $0x60] sm:$0xff]  ;;  %v91_v37 = vld [vmem:[%s3584_s0 + $0x68] sm:$0xff]  ;;  %v115_v40 = vpack.c.bf16 %v89_v33, %v88_v32 }
   0xa   :  { %v138_v38 = vld [vmem:[%s3584_s0 + $0x160] sm:$0xff]  ;;  %v139_v39 = vld [vmem:[%s3584_s0 + $0x168] sm:$0xff]  ;;  %v163_v41 = vpack.c.bf16 %v137_v35, %v136_v34  ;;  %v116_v42 = vpack.c.bf16 %v91_v37, %v90_v36  ;;  %v92_v44 = vld [vmem:[%s3584_s0 + $0x70] sm:$0xff] }
   0xb   :  { %v164_v43 = vpack.c.bf16 %v139_v39, %v138_v38  ;;  %v93_v45 = vld [vmem:[%s3584_s0 + $0x78] sm:$0xff]  ;;  %v140_v46 = vld [vmem:[%s3584_s0 + $0x170] sm:$0xff]  ;;  %v94_v48 = vld [vmem:[%s3584_s0 + $0x80] sm:$0xff] }
   0xc   :  { %v141_v47 = vld [vmem:[%s3584_s0 + $0x178] sm:$0xff]  ;;  %v95_v49 = vld [vmem:[%s3584_s0 + $0x88] sm:$0xff]  ;;  %v142_v50 = vld [vmem:[%s3584_s0 + $0x180] sm:$0xff]  ;;  %v117_v54 = vpack.c.bf16 %v93_v45, %v92_v44 }
   0xd   :  { %v143_v51 = vld [vmem:[%s3584_s0 + $0x188] sm:$0xff]  ;;  %v2693_v52 = vld [vmem:[%s3585_s3 + $0x38] sm:$0xff]   ;;  %v2694_v53 = vld [vmem:[%s3585_s3 + $0x30] sm:$0xff]   ;;  %v165_v55 = vpack.c.bf16 %v141_v47, %v140_v46  ;;  %v118_v56 = vpack.c.bf16 %v95_v49, %v94_v48 }
   0xe   :  { %2342 = vmatmul.mubr.msk.bf16.gmra.mxu0 %vm178_vm1, %v113_v28  ;;  %2403 = vmatprep.subr.bf16.mxu0 %v2693_v52  ;;  %v166_v57 = vpack.c.bf16 %v143_v51, %v142_v50  ;;  %v96_v58 = vld [vmem:[%s3584_s0 + $0x90] sm:$0xff]  ;;  %v97_v59 = vld [vmem:[%s3584_s0 + $0x98] sm:$0xff]  ;;  %v2695_v62 = vld [vmem:[%s3585_s3 + $0x28] sm:$0xff]  }
   0xf   :  { %2376 = vmatmul.mubr.msk.bf16.gmra.mxu1 %vm178_vm1, %v161_v29  ;;  %2345 = vmatprep.mubr.msk.bf16.mxu0 %vm178_vm1, %v114_v30  ;;  %v144_v60 = vld [vmem:[%s3584_s0 + $0x190] sm:$0xff]  ;;  %v145_v61 = vld [vmem:[%s3584_s0 + $0x198] sm:$0xff]  ;;  %v98_v63 = vld [vmem:[%s3584_s0 + $0xa0] sm:$0xff]  ;;  %v119_v4 = vpack.c.bf16 %v97_v59, %v96_v58 }
  0x10   :  { %2379 = vmatprep.mubr.msk.bf16.mxu1 %vm178_vm1, %v162_v31  ;;  %2451 = vmatprep.subr.bf16.mxu1 %v2693_v52  ;;  %v99_v0 = vld [vmem:[%s3584_s0 + $0xa8] sm:$0xff]  ;;  %v146_v1 = vld [vmem:[%s3584_s0 + $0x1a0] sm:$0xff]  ;;  %v167_v5 = vpack.c.bf16 %v145_v61, %v144_v60  ;;  %v2697_v8 = vld [vmem:[%s3585_s3 + $0x18] sm:$0xff]  }
  0x11   :  { %2404 = vmatpush3.bf16.msra.mxu0 %v2693_v52  ;;  %2452 = vmatpush3.bf16.msra.mxu1 %v2693_v52  ;;  %v147_v2 = vld [vmem:[%s3584_s0 + $0x1a8] sm:$0xff]  ;;  %v2696_v3 = vld [vmem:[%s3585_s3 + $0x20] sm:$0xff]   ;;  %v120_v6 = vpack.c.bf16 %v99_v0, %v98_v63  ;;  %v100_v9 = vld [vmem:[%s3584_s0 + $0xb0] sm:$0xff] }
  0x12   :  { %2405 = vmatprep.subr.bf16.mxu0 %v2694_v53  ;;  %2453 = vmatprep.subr.bf16.mxu1 %v2694_v53  ;;  %v168_v7 = vpack.c.bf16 %v147_v2, %v146_v1  ;;  %v101_v10 = vld [vmem:[%s3584_s0 + $0xb8] sm:$0xff]  ;;  %v148_v11 = vld [vmem:[%s3584_s0 + $0x1b0] sm:$0xff]  ;;  %v102_v13 = vld [vmem:[%s3584_s0 + $0xc0] sm:$0xff] }
  0x13   :  { %v149_v12 = vld [vmem:[%s3584_s0 + $0x1b8] sm:$0xff]  ;;  %v103_v14 = vld [vmem:[%s3584_s0 + $0xc8] sm:$0xff]  ;;  %v150_v15 = vld [vmem:[%s3584_s0 + $0x1c0] sm:$0xff]  ;;  %v121_v18 = vpack.c.bf16 %v101_v10, %v100_v9 }
  0x14   :  { %v151_v16 = vld [vmem:[%s3584_s0 + $0x1c8] sm:$0xff]  ;;  %v2698_v17 = vld [vmem:[%s3585_s3 + $0x10] sm:$0xff]   ;;  %v169_v19 = vpack.c.bf16 %v149_v12, %v148_v11  ;;  %v122_v20 = vpack.c.bf16 %v103_v14, %v102_v13  ;;  %v105_v24 = vld [vmem:[%s3584_s0 + $0xd8] sm:$0xff] }
  0x15   :  { %2406 = vmatpush3.bf16.msra.mxu0 %v2694_v53  ;;  %2454 = vmatpush3.bf16.msra.mxu1 %v2694_v53  ;;  %v170_v21 = vpack.c.bf16 %v151_v16, %v150_v15  ;;  %v2699_v22 = vld [vmem:[%s3585_s3 + $0x8] sm:$0xff]   ;;  %v104_v23 = vld [vmem:[%s3584_s0 + $0xd0] sm:$0xff]  ;;  %v153_v26 = vld [vmem:[%s3584_s0 + $0x1d8] sm:$0xff] }
  0x16   :  { %2346 = vmatmul.mubr.msk.bf16.gmra.mxu0 %vm178_vm1, %v115_v40  ;;  %2407 = vmatprep.subr.bf16.mxu0 %v2695_v62  ;;  %v152_v25 = vld [vmem:[%s3584_s0 + $0x1d0] sm:$0xff]  ;;  %v106_v27 = vld [vmem:[%s3584_s0 + $0xe0] sm:$0xff]  ;;  %v107_v28 = vld [vmem:[%s3584_s0 + $0xe8] sm:$0xff]  ;;  %v123_v31 = vpack.c.bf16 %v105_v24, %v104_v23 }
  0x17   :  { %2380 = vmatmul.mubr.msk.bf16.gmra.mxu1 %vm178_vm1, %v163_v41  ;;  %2349 = vmatprep.mubr.msk.bf16.mxu0 %vm178_vm1, %v116_v42  ;;  %v154_v29 = vld [vmem:[%s3584_s0 + $0x1e0] sm:$0xff]  ;;  %v155_v30 = vld [vmem:[%s3584_s0 + $0x1e8] sm:$0xff]  ;;  %v171_v32 = vpack.c.bf16 %v153_v26, %v152_v25  ;;  %v124_v33 = vpack.c.bf16 %v107_v28, %v106_v27  ;;  %v108_v35 = vld [vmem:[%s3584_s0 + $0xf0] sm:$0xff] }
  0x18   :  { %2383 = vmatprep.mubr.msk.bf16.mxu1 %vm178_vm1, %v164_v43  ;;  %2455 = vmatprep.subr.bf16.mxu1 %v2695_v62  ;;  %v172_v34 = vpack.c.bf16 %v155_v30, %v154_v29  ;;  %v109_v36 = vld [vmem:[%s3584_s0 + $0xf8] sm:$0xff]  ;;  %v156_v37 = vld [vmem:[%s3584_s0 + $0x1f0] sm:$0xff]  ;;  %v2700_v41 = vld [vmem:[%s3585_s3] sm:$0xff]  }
  0x19   :  { %2408 = vmatpush3.bf16.msra.mxu0 %v2695_v62  ;;  %2456 = vmatpush3.bf16.msra.mxu1 %v2695_v62  ;;  %v157_v38 = vld [vmem:[%s3584_s0 + $0x1f8] sm:$0xff]  ;;  %v125_v39 = vpack.c.bf16 %v109_v36, %v108_v35  ;;  %v3009_v47 = vld [vmem:[%s3586_s2] ss:$0 sm:$0xff]  ;;  %v2702_v15 = vld [vmem:[%s3585_s3 + $0x70] sm:$0xff]  }
  0x1a   :  { %2409 = vmatprep.subr.bf16.mxu0 %v2696_v3  ;;  %2457 = vmatprep.subr.bf16.mxu1 %v2696_v3  ;;  %v173_v40 = vpack.c.bf16 %v157_v38, %v156_v37  ;;  %v2701_v42 = vld [vmem:[%s3585_s3 + $0x78] sm:$0xff]   ;;  %v2703_v29 = vld [vmem:[%s3585_s3 + $0x68] sm:$0xff]  }
  0x1d   :  { %2410 = vmatpush3.bf16.msra.mxu0 %v2696_v3  ;;  %2458 = vmatpush3.bf16.msra.mxu1 %v2696_v3 }
  0x1e   :  { %2350 = vmatmul.mubr.msk.bf16.gmra.mxu0 %vm178_vm1, %v117_v54  ;;  %2411 = vmatprep.subr.bf16.mxu0 %v2697_v8 }
  0x1f   :  { %2384 = vmatmul.mubr.msk.bf16.gmra.mxu1 %vm178_vm1, %v165_v55  ;;  %2353 = vmatprep.mubr.msk.bf16.mxu0 %vm178_vm1, %v118_v56 }
  0x20   :  { %2387 = vmatprep.mubr.msk.bf16.mxu1 %vm178_vm1, %v166_v57  ;;  %2459 = vmatprep.subr.bf16.mxu1 %v2697_v8 }
  0x21   :  { %2412 = vmatpush3.bf16.msra.mxu0 %v2697_v8  ;;  %2460 = vmatpush3.bf16.msra.mxu1 %v2697_v8 }
  0x22   :  { %2413 = vmatprep.subr.bf16.mxu0 %v2698_v17  ;;  %2461 = vmatprep.subr.bf16.mxu1 %v2698_v17 }
  0x25   :  { %2414 = vmatpush3.bf16.msra.mxu0 %v2698_v17  ;;  %2462 = vmatpush3.bf16.msra.mxu1 %v2698_v17 }
  0x26   :  { %2354 = vmatmul.mubr.msk.bf16.gmra.mxu0 %vm178_vm1, %v119_v4  ;;  %2415 = vmatprep.subr.bf16.mxu0 %v2699_v22 }
  0x27   :  { %2388 = vmatmul.mubr.msk.bf16.gmra.mxu1 %vm178_vm1, %v167_v5  ;;  %2357 = vmatprep.mubr.msk.bf16.mxu0 %vm178_vm1, %v120_v6 }
  0x28   :  { %2391 = vmatprep.mubr.msk.bf16.mxu1 %vm178_vm1, %v168_v7  ;;  %2463 = vmatprep.subr.bf16.mxu1 %v2699_v22 }
  0x29   :  { %2416 = vmatpush3.bf16.msra.mxu0 %v2699_v22  ;;  %2464 = vmatpush3.bf16.msra.mxu1 %v2699_v22 }
  0x2a   :  { %2417 = vmatprep.subr.bf16.mxu0 %v2700_v41  ;;  %2465 = vmatprep.subr.bf16.mxu1 %v2700_v41 }
  0x2d   :  { %2418 = vmatpush3.bf16.msra.mxu0 %v2700_v41  ;;  %2466 = vmatpush3.bf16.msra.mxu1 %v2700_v41 }
  0x2e   :  { %2358 = vmatmul.mubr.msk.bf16.gmra.mxu0 %vm178_vm1, %v121_v18  ;;  %2499 = vmatprep.subr.bf16.mxu0 %v2701_v42 }
  0x2f   :  { %2392 = vmatmul.mubr.msk.bf16.gmra.mxu1 %vm178_vm1, %v169_v19  ;;  %2361 = vmatprep.mubr.msk.bf16.mxu0 %vm178_vm1, %v122_v20 }
  0x30   :  { %2395 = vmatprep.mubr.msk.bf16.mxu1 %vm178_vm1, %v170_v21  ;;  %2547 = vmatprep.subr.bf16.mxu1 %v2701_v42 }
  0x36   :  { %2362 = vmatmul.mubr.msk.bf16.gmra.mxu0 %vm178_vm1, %v123_v31 }
  0x37   :  { %2396 = vmatmul.mubr.msk.bf16.gmra.mxu1 %vm178_vm1, %v171_v32  ;;  %2365 = vmatprep.mubr.msk.bf16.mxu0 %vm178_vm1, %v124_v33 }
  0x38   :  { %2399 = vmatprep.mubr.msk.bf16.mxu1 %vm178_vm1, %v172_v34 }
  0x3e   :  { %2366 = vmatmul.mubr.msk.bf16.gmra.mxu0 %vm178_vm1, %v125_v39 }
  0x3f   :  { %2400 = vmatmul.mubr.msk.bf16.gmra.mxu1 %vm178_vm1, %v173_v40 }
  0xc6   :  { %v2339_v43 = vpop.f32.mrf.mxu0 }
  0xc7   :  { %v2373_v44 = vpop.f32.mrf.mxu1  ;;  %v274_v54 = vadd.f32 %v2339_v43, %v3009_v47 }
  0xc8   :  { %v265_v45 = vpop.f32.mrf.mxu0  ;;  %v531_v55 = vadd.f32 %v2373_v44, %v3009_v47 }
  0xc9   :  { %v522_v46 = vpop.f32.mrf.mxu1  ;;  %v266_v50 = vadd.f32 %v3009_v47, %v265_v45  ;;  %v394_v4 = vmax.f32 %v274_v54, 0.0  ;;  %v2704_v45 = vld [vmem:[%s3585_s3 + $0x60] sm:$0xff]  }
  0xca   :  { %v2340_v48 = vpop.f32.mrf.mxu0  ;;  %v523_v51 = vadd.f32 %v3009_v47, %v522_v46  ;;  %v651_v5 = vmax.f32 %v531_v55, 0.0 }
  0xcb   :  { %v2374_v49 = vpop.f32.mrf.mxu1  ;;  %v277_v52 = vadd.f32 %v2340_v48, %v3009_v47  ;;  %v392_v0 = vmax.f32 %v266_v50, 0.0 }
  0xcc   :  { %v534_v53 = vadd.f32 %v2374_v49, %v3009_v47  ;;  %v268_v56 = vpop.f32.mrf.mxu0  ;;  %v649_v1 = vmax.f32 %v523_v51, 0.0 }
  0xcd   :  { %v525_v57 = vpop.f32.mrf.mxu1  ;;  %v269_v58 = vadd.f32 %v3009_v47, %v268_v56  ;;  %v395_v60 = vmax.f32 %v277_v52, 0.0 }
  0xce   :  { %v526_v59 = vadd.f32 %v3009_v47, %v525_v57  ;;  %v652_v61 = vmax.f32 %v534_v53, 0.0  ;;  %v2343_v62 = vpop.f32.mrf.mxu0 }
  0xcf   :  { %v2377_v63 = vpop.f32.mrf.mxu1  ;;  %v393_v2 = vmax.f32 %v269_v58, 0.0  ;;  %v425_v10 = vpack.c.bf16 %v395_v60, %v394_v4  ;;  %v290_v19 = vadd.f32 %v2343_v62, %v3009_v47  ;;  %v2705_v60 = vld [vmem:[%s3585_s3 + $0x58] sm:$0xff]  }
  0xd0   :  { %v650_v3 = vmax.f32 %v526_v59, 0.0  ;;  %v281_v6 = vpop.f32.mrf.mxu0  ;;  %v682_v11 = vpack.c.bf16 %v652_v61, %v651_v5  ;;  %v547_v20 = vadd.f32 %v2377_v63, %v3009_v47 }
  0xd1   :  { %v538_v7 = vpop.f32.mrf.mxu1  ;;  %v424_v8 = vpack.c.bf16 %v393_v2, %v392_v0  ;;  %v282_v12 = vadd.f32 %v3009_v47, %v281_v6  ;;  %v398_v34 = vmax.f32 %v290_v19, 0.0 }
  0xd2   :  { %v681_v9 = vpack.c.bf16 %v650_v3, %v649_v1  ;;  %v2344_v13 = vpop.f32.mrf.mxu0  ;;  %v539_v16 = vadd.f32 %v3009_v47, %v538_v7  ;;  %v655_v35 = vmax.f32 %v547_v20, 0.0 }
  0xd3   :  { %v2378_v14 = vpop.f32.mrf.mxu1  ;;  %v293_v17 = vadd.f32 %v2344_v13, %v3009_v47  ;;  %2419 = vmatprep.mubr.bf16.mxu0 %v424_v8  ;;  %v396_v30 = vmax.f32 %v282_v12, 0.0  ;;  %v2706_v12 = vld [vmem:[%s3585_s3 + $0x50] sm:$0xff]  }
  0xd4   :  { %v550_v18 = vadd.f32 %v2378_v14, %v3009_v47  ;;  %2467 = vmatprep.mubr.bf16.mxu1 %v681_v9  ;;  %v284_v21 = vpop.f32.mrf.mxu0  ;;  %2420 = vmatmul.mubr.bf16.vlgmr.msra.gmra.mxu0 %v425_v10  ;;  %v653_v31 = vmax.f32 %v539_v16, 0.0 }
  0xd5   :  { %v541_v22 = vpop.f32.mrf.mxu1  ;;  %2468 = vmatmul.mubr.bf16.vlgmr.msra.gmra.mxu1 %v682_v11  ;;  %v285_v23 = vadd.f32 %v3009_v47, %v284_v21  ;;  %2500 = vmatpush3.bf16.msra.mxu0 %v2701_v42  ;;  %v399_v25 = vmax.f32 %v293_v17, 0.0 }
  0xd6   :  { %v542_v24 = vadd.f32 %v3009_v47, %v541_v22  ;;  %2548 = vmatpush3.bf16.msra.mxu1 %v2701_v42  ;;  %v656_v26 = vmax.f32 %v550_v18, 0.0  ;;  %v2347_v27 = vpop.f32.mrf.mxu0  ;;  %2501 = vmatprep.subr.bf16.mxu0 %v2702_v15 }
  0xd7   :  { %v2381_v28 = vpop.f32.mrf.mxu1  ;;  %2549 = vmatprep.subr.bf16.mxu1 %v2702_v15  ;;  %v397_v32 = vmax.f32 %v285_v23, 0.0  ;;  %v427_v40 = vpack.c.bf16 %v399_v25, %v398_v34  ;;  %v306_v50 = vadd.f32 %v2347_v27, %v3009_v47 }
  0xd8   :  { %v654_v33 = vmax.f32 %v542_v24, 0.0  ;;  %v297_v36 = vpop.f32.mrf.mxu0  ;;  %v684_v41 = vpack.c.bf16 %v656_v26, %v655_v35  ;;  %v563_v51 = vadd.f32 %v2381_v28, %v3009_v47  ;;  %v2707_v26 = vld [vmem:[%s3585_s3 + $0x48] sm:$0xff]  }
  0xd9   :  { %v554_v37 = vpop.f32.mrf.mxu1  ;;  %v426_v38 = vpack.c.bf16 %v397_v32, %v396_v30  ;;  %2502 = vmatpush3.bf16.msra.mxu0 %v2702_v15  ;;  %v298_v42 = vadd.f32 %v3009_v47, %v297_v36  ;;  %v402_v1 = vmax.f32 %v306_v50, 0.0 }
  0xda   :  { %v683_v39 = vpack.c.bf16 %v654_v33, %v653_v31  ;;  %v2348_v43 = vpop.f32.mrf.mxu0  ;;  %2550 = vmatpush3.bf16.msra.mxu1 %v2702_v15  ;;  %2503 = vmatprep.subr.bf16.mxu0 %v2703_v29  ;;  %v555_v46 = vadd.f32 %v3009_v47, %v554_v37  ;;  %v659_v2 = vmax.f32 %v563_v51, 0.0 }
  0xdb   :  { %v2382_v44 = vpop.f32.mrf.mxu1  ;;  %v309_v48 = vadd.f32 %v2348_v43, %v3009_v47  ;;  %2423 = vmatprep.mubr.bf16.mxu0 %v426_v38  ;;  %2551 = vmatprep.subr.bf16.mxu1 %v2703_v29  ;;  %v400_v61 = vmax.f32 %v298_v42, 0.0 }
  0xdc   :  { %v566_v49 = vadd.f32 %v2382_v44, %v3009_v47  ;;  %2471 = vmatprep.mubr.bf16.mxu1 %v683_v39  ;;  %v300_v52 = vpop.f32.mrf.mxu0  ;;  %2424 = vmatmul.mubr.bf16.gmra.mxu0 %v427_v40  ;;  %v657_v62 = vmax.f32 %v555_v46, 0.0 }
  0xdd   :  { %v557_v53 = vpop.f32.mrf.mxu1  ;;  %2472 = vmatmul.mubr.bf16.gmra.mxu1 %v684_v41  ;;  %v301_v54 = vadd.f32 %v3009_v47, %v300_v52  ;;  %2504 = vmatpush3.bf16.msra.mxu0 %v2703_v29  ;;  %v403_v56 = vmax.f32 %v309_v48, 0.0 }
  0xde   :  { %v558_v55 = vadd.f32 %v3009_v47, %v557_v53  ;;  %v660_v57 = vmax.f32 %v566_v49, 0.0  ;;  %v2351_v58 = vpop.f32.mrf.mxu0  ;;  %2552 = vmatpush3.bf16.msra.mxu1 %v2703_v29  ;;  %2505 = vmatprep.subr.bf16.mxu0 %v2704_v45 }
  0xdf   :  { %v2385_v59 = vpop.f32.mrf.mxu1  ;;  %v401_v63 = vmax.f32 %v301_v54, 0.0  ;;  %2553 = vmatprep.subr.bf16.mxu1 %v2704_v45  ;;  %v429_v7 = vpack.c.bf16 %v403_v56, %v402_v1  ;;  %v322_v16 = vadd.f32 %v2351_v58, %v3009_v47 }
  0xe0   :  { %v658_v0 = vmax.f32 %v558_v55, 0.0  ;;  %v313_v3 = vpop.f32.mrf.mxu0  ;;  %v686_v8 = vpack.c.bf16 %v660_v57, %v659_v2  ;;  %v579_v17 = vadd.f32 %v2385_v59, %v3009_v47 }
  0xe1   :  { %v570_v4 = vpop.f32.mrf.mxu1  ;;  %v428_v5 = vpack.c.bf16 %v401_v63, %v400_v61  ;;  %2506 = vmatpush3.bf16.msra.mxu0 %v2704_v45  ;;  %v314_v9 = vadd.f32 %v3009_v47, %v313_v3  ;;  %v406_v31 = vmax.f32 %v322_v16, 0.0 }
  0xe2   :  { %v685_v6 = vpack.c.bf16 %v658_v0, %v657_v62  ;;  %v2352_v10 = vpop.f32.mrf.mxu0  ;;  %2554 = vmatpush3.bf16.msra.mxu1 %v2704_v45  ;;  %2507 = vmatprep.subr.bf16.mxu0 %v2705_v60  ;;  %v571_v13 = vadd.f32 %v3009_v47, %v570_v4  ;;  %v663_v32 = vmax.f32 %v579_v17, 0.0 }
  0xe3   :  { %v2386_v11 = vpop.f32.mrf.mxu1  ;;  %v325_v14 = vadd.f32 %v2352_v10, %v3009_v47  ;;  %2427 = vmatprep.mubr.bf16.mxu0 %v428_v5  ;;  %2555 = vmatprep.subr.bf16.mxu1 %v2705_v60  ;;  %v404_v27 = vmax.f32 %v314_v9, 0.0 }
  0xe4   :  { %v582_v15 = vadd.f32 %v2386_v11, %v3009_v47  ;;  %2475 = vmatprep.mubr.bf16.mxu1 %v685_v6  ;;  %v316_v18 = vpop.f32.mrf.mxu0  ;;  %2428 = vmatmul.mubr.bf16.gmra.mxu0 %v429_v7  ;;  %v661_v28 = vmax.f32 %v571_v13, 0.0 }
  0xe5   :  { %v573_v19 = vpop.f32.mrf.mxu1  ;;  %2476 = vmatmul.mubr.bf16.gmra.mxu1 %v686_v8  ;;  %v317_v20 = vadd.f32 %v3009_v47, %v316_v18  ;;  %2508 = vmatpush3.bf16.msra.mxu0 %v2705_v60  ;;  %v407_v22 = vmax.f32 %v325_v14, 0.0 }
  0xe6   :  { %v574_v21 = vadd.f32 %v3009_v47, %v573_v19  ;;  %v664_v23 = vmax.f32 %v582_v15, 0.0  ;;  %v2355_v24 = vpop.f32.mrf.mxu0  ;;  %2556 = vmatpush3.bf16.msra.mxu1 %v2705_v60  ;;  %2509 = vmatprep.subr.bf16.mxu0 %v2706_v12 }
  0xe7   :  { %v2389_v25 = vpop.f32.mrf.mxu1  ;;  %v405_v29 = vmax.f32 %v317_v20, 0.0  ;;  %2557 = vmatprep.subr.bf16.mxu1 %v2706_v12  ;;  %v431_v37 = vpack.c.bf16 %v407_v22, %v406_v31  ;;  %v338_v45 = vadd.f32 %v2355_v24, %v3009_v47 }
  0xe8   :  { %v662_v30 = vmax.f32 %v574_v21, 0.0  ;;  %v329_v33 = vpop.f32.mrf.mxu0  ;;  %v688_v38 = vpack.c.bf16 %v664_v23, %v663_v32  ;;  %v595_v46 = vadd.f32 %v2389_v25, %v3009_v47 }
  0xe9   :  { %v586_v34 = vpop.f32.mrf.mxu1  ;;  %v430_v35 = vpack.c.bf16 %v405_v29, %v404_v27  ;;  %2510 = vmatpush3.bf16.msra.mxu0 %v2706_v12  ;;  %v330_v39 = vadd.f32 %v3009_v47, %v329_v33  ;;  %v410_v60 = vmax.f32 %v338_v45, 0.0 }
  0xea   :  { %v687_v36 = vpack.c.bf16 %v662_v30, %v661_v28  ;;  %v2356_v40 = vpop.f32.mrf.mxu0  ;;  %2558 = vmatpush3.bf16.msra.mxu1 %v2706_v12  ;;  %2511 = vmatprep.subr.bf16.mxu0 %v2707_v26  ;;  %v587_v42 = vadd.f32 %v3009_v47, %v586_v34  ;;  %v667_v61 = vmax.f32 %v595_v46, 0.0 }
  0xeb   :  { %v2390_v41 = vpop.f32.mrf.mxu1  ;;  %v341_v43 = vadd.f32 %v2356_v40, %v3009_v47  ;;  %2431 = vmatprep.mubr.bf16.mxu0 %v430_v35  ;;  %2559 = vmatprep.subr.bf16.mxu1 %v2707_v26  ;;  %v408_v56 = vmax.f32 %v330_v39, 0.0 }
  0xec   :  { %v598_v44 = vadd.f32 %v2390_v41, %v3009_v47  ;;  %2479 = vmatprep.mubr.bf16.mxu1 %v687_v36  ;;  %v332_v48 = vpop.f32.mrf.mxu0  ;;  %2432 = vmatmul.mubr.bf16.gmra.mxu0 %v431_v37  ;;  %v665_v57 = vmax.f32 %v587_v42, 0.0 }
  0xed   :  { %v589_v49 = vpop.f32.mrf.mxu1  ;;  %2480 = vmatmul.mubr.bf16.gmra.mxu1 %v688_v38  ;;  %v333_v50 = vadd.f32 %v3009_v47, %v332_v48  ;;  %2512 = vmatpush3.bf16.msra.mxu0 %v2707_v26  ;;  %v411_v52 = vmax.f32 %v341_v43, 0.0 }
  0xee   :  { %v590_v51 = vadd.f32 %v3009_v47, %v589_v49  ;;  %v668_v53 = vmax.f32 %v598_v44, 0.0  ;;  %v2359_v54 = vpop.f32.mrf.mxu0  ;;  %2560 = vmatpush3.bf16.msra.mxu1 %v2707_v26 }
  0xef   :  { %v2393_v55 = vpop.f32.mrf.mxu1  ;;  %v409_v58 = vmax.f32 %v333_v50, 0.0  ;;  %v433_v2 = vpack.c.bf16 %v411_v52, %v410_v60  ;;  %v354_v10 = vadd.f32 %v2359_v54, %v3009_v47 }
  0xf0   :  { %v666_v59 = vmax.f32 %v590_v51, 0.0  ;;  %v345_v62 = vpop.f32.mrf.mxu0  ;;  %v690_v3 = vpack.c.bf16 %v668_v53, %v667_v61  ;;  %v611_v11 = vadd.f32 %v2393_v55, %v3009_v47 }
  0xf1   :  { %v602_v63 = vpop.f32.mrf.mxu1  ;;  %v432_v0 = vpack.c.bf16 %v409_v58, %v408_v56  ;;  %v346_v4 = vadd.f32 %v3009_v47, %v345_v62  ;;  %v414_v24 = vmax.f32 %v354_v10, 0.0 }
  0xf2   :  { %v689_v1 = vpack.c.bf16 %v666_v59, %v665_v57  ;;  %v2360_v5 = vpop.f32.mrf.mxu0  ;;  %v603_v7 = vadd.f32 %v3009_v47, %v602_v63  ;;  %v671_v25 = vmax.f32 %v611_v11, 0.0 }
  0xf3   :  { %v2394_v6 = vpop.f32.mrf.mxu1  ;;  %v357_v8 = vadd.f32 %v2360_v5, %v3009_v47  ;;  %2435 = vmatprep.mubr.bf16.mxu0 %v432_v0  ;;  %v412_v20 = vmax.f32 %v346_v4, 0.0 }
  0xf4   :  { %v614_v9 = vadd.f32 %v2394_v6, %v3009_v47  ;;  %2483 = vmatprep.mubr.bf16.mxu1 %v689_v1  ;;  %v348_v12 = vpop.f32.mrf.mxu0  ;;  %2436 = vmatmul.mubr.bf16.gmra.mxu0 %v433_v2  ;;  %v669_v21 = vmax.f32 %v603_v7, 0.0 }
  0xf5   :  { %v605_v13 = vpop.f32.mrf.mxu1  ;;  %2484 = vmatmul.mubr.bf16.gmra.mxu1 %v690_v3  ;;  %v349_v14 = vadd.f32 %v3009_v47, %v348_v12  ;;  %v415_v16 = vmax.f32 %v357_v8, 0.0 }
  0xf6   :  { %v606_v15 = vadd.f32 %v3009_v47, %v605_v13  ;;  %v672_v17 = vmax.f32 %v614_v9, 0.0  ;;  %v2363_v18 = vpop.f32.mrf.mxu0 }
  0xf7   :  { %v2397_v19 = vpop.f32.mrf.mxu1  ;;  %v413_v22 = vmax.f32 %v349_v14, 0.0  ;;  %v435_v30 = vpack.c.bf16 %v415_v16, %v414_v24  ;;  %v370_v38 = vadd.f32 %v2363_v18, %v3009_v47 }
  0xf8   :  { %v670_v23 = vmax.f32 %v606_v15, 0.0  ;;  %v361_v26 = vpop.f32.mrf.mxu0  ;;  %v692_v31 = vpack.c.bf16 %v672_v17, %v671_v25  ;;  %v627_v39 = vadd.f32 %v2397_v19, %v3009_v47 }
  0xf9   :  { %v618_v27 = vpop.f32.mrf.mxu1  ;;  %v434_v28 = vpack.c.bf16 %v413_v22, %v412_v20  ;;  %v362_v32 = vadd.f32 %v3009_v47, %v361_v26  ;;  %v418_v53 = vmax.f32 %v370_v38, 0.0  ;;  %v3102_v26 = vld [vmem:[%s3586_s2 + $0x1] ss:$0 sm:$0xff] }
  0xfa   :  { %v691_v29 = vpack.c.bf16 %v670_v23, %v669_v21  ;;  %v2364_v33 = vpop.f32.mrf.mxu0  ;;  %v619_v35 = vadd.f32 %v3009_v47, %v618_v27  ;;  %v675_v54 = vmax.f32 %v627_v39, 0.0  ;;  %v2709_v21 = vld [vmem:[%s3587_s4 + $0x38] sm:$0xff]  }
  0xfb   :  { %v2398_v34 = vpop.f32.mrf.mxu1  ;;  %v373_v36 = vadd.f32 %v2364_v33, %v3009_v47  ;;  %2439 = vmatprep.mubr.bf16.mxu0 %v434_v28  ;;  %v416_v49 = vmax.f32 %v362_v32, 0.0 }
  0xfc   :  { %v630_v37 = vadd.f32 %v2398_v34, %v3009_v47  ;;  %2487 = vmatprep.mubr.bf16.mxu1 %v691_v29  ;;  %v364_v40 = vpop.f32.mrf.mxu0  ;;  %2440 = vmatmul.mubr.bf16.gmra.mxu0 %v435_v30  ;;  %v673_v50 = vmax.f32 %v619_v35, 0.0 }
  0xfd   :  { %v621_v41 = vpop.f32.mrf.mxu1  ;;  %2488 = vmatmul.mubr.bf16.gmra.mxu1 %v692_v31  ;;  %v365_v42 = vadd.f32 %v3009_v47, %v364_v40  ;;  %v419_v44 = vmax.f32 %v373_v36, 0.0 }
  0xfe   :  { %v622_v43 = vadd.f32 %v3009_v47, %v621_v41  ;;  %v676_v45 = vmax.f32 %v630_v37, 0.0  ;;  %v2367_v46 = vpop.f32.mrf.mxu0 }
  0xff   :  { %v2401_v48 = vpop.f32.mrf.mxu1  ;;  %v417_v51 = vmax.f32 %v365_v42, 0.0  ;;  %v437_v59 = vpack.c.bf16 %v419_v44, %v418_v53  ;;  %v386_v3 = vadd.f32 %v2367_v46, %v3009_v47 }
 0x100   :  { %v674_v52 = vmax.f32 %v622_v43, 0.0  ;;  %v377_v55 = vpop.f32.mrf.mxu0  ;;  %v694_v60 = vpack.c.bf16 %v676_v45, %v675_v54  ;;  %v643_v4 = vadd.f32 %v2401_v48, %v3009_v47 }
 0x101   :  { %v634_v56 = vpop.f32.mrf.mxu1  ;;  %v436_v57 = vpack.c.bf16 %v417_v51, %v416_v49  ;;  %v378_v61 = vadd.f32 %v3009_v47, %v377_v55  ;;  %v422_v15 = vmax.f32 %v386_v3, 0.0 }
 0x102   :  { %v693_v58 = vpack.c.bf16 %v674_v52, %v673_v50  ;;  %v2368_v62 = vpop.f32.mrf.mxu0  ;;  %v635_v0 = vadd.f32 %v3009_v47, %v634_v56  ;;  %v679_v16 = vmax.f32 %v643_v4, 0.0 }
 0x103   :  { %v2402_v63 = vpop.f32.mrf.mxu1  ;;  %v389_v1 = vadd.f32 %v2368_v62, %v3009_v47  ;;  %2443 = vmatprep.mubr.bf16.mxu0 %v436_v57  ;;  %v420_v11 = vmax.f32 %v378_v61, 0.0 }
 0x104   :  { %v646_v2 = vadd.f32 %v2402_v63, %v3009_v47  ;;  %2491 = vmatprep.mubr.bf16.mxu1 %v693_v58  ;;  %v380_v5 = vpop.f32.mrf.mxu0  ;;  %2444 = vmatmul.mubr.bf16.gmra.mxu0 %v437_v59  ;;  %v677_v12 = vmax.f32 %v635_v0, 0.0  ;;  %v2710_v59 = vld [vmem:[%s3587_s4 + $0x30] sm:$0xff]  }
 0x105   :  { %v637_v6 = vpop.f32.mrf.mxu1  ;;  %2492 = vmatmul.mubr.bf16.gmra.mxu1 %v694_v60  ;;  %v381_v7 = vadd.f32 %v3009_v47, %v380_v5  ;;  %v423_v9 = vmax.f32 %v389_v1, 0.0 }
 0x106   :  { %v638_v8 = vadd.f32 %v3009_v47, %v637_v6  ;;  %v680_v10 = vmax.f32 %v646_v2, 0.0  ;;  %v2708_v47 = vld [vmem:[%s3585_s3 + $0x40] sm:$0xff]  }
 0x107   :  { %v421_v13 = vmax.f32 %v381_v7, 0.0  ;;  %v439_v19 = vpack.c.bf16 %v423_v9, %v422_v15  ;;  %2513 = vmatprep.subr.bf16.mxu0 %v2708_v47  ;;  %2561 = vmatprep.subr.bf16.mxu1 %v2708_v47  ;;  %v2711_v9 = vld [vmem:[%s3587_s4 + $0x28] sm:$0xff]  }
 0x108   :  { %v678_v14 = vmax.f32 %v638_v8, 0.0  ;;  %v696_v20 = vpack.c.bf16 %v680_v10, %v679_v16  ;;  %2514 = vmatpush3.bf16.msra.mxu0 %v2708_v47  ;;  %2562 = vmatpush3.bf16.msra.mxu1 %v2708_v47 }
 0x109   :  { %v438_v17 = vpack.c.bf16 %v421_v13, %v420_v11  ;;  %2595 = vmatprep.subr.bf16.mxu0 %v2709_v21  ;;  %2643 = vmatprep.subr.bf16.mxu1 %v2709_v21 }
 0x10a   :  { %v695_v18 = vpack.c.bf16 %v678_v14, %v677_v12 }
 0x10b   :  { %2447 = vmatprep.mubr.bf16.mxu0 %v438_v17 }
 0x10c   :  { %2495 = vmatprep.mubr.bf16.mxu1 %v695_v18  ;;  %2448 = vmatmul.mubr.bf16.gmra.mxu0 %v439_v19 }
 0x10d   :  { %2496 = vmatmul.mubr.bf16.gmra.mxu1 %v696_v20 }
 0x194   :  { %v2421_v22 = vpop.f32.mrf.mxu0 }
 0x195   :  { %v2469_v23 = vpop.f32.mrf.mxu1  ;;  %v792_v33 = vadd.f32 %v2421_v22, %v3102_v26 }
 0x196   :  { %v783_v24 = vpop.f32.mrf.mxu0  ;;  %v1001_v34 = vadd.f32 %v2469_v23, %v3102_v26 }
 0x197   :  { %v992_v25 = vpop.f32.mrf.mxu1  ;;  %v784_v29 = vadd.f32 %v3102_v26, %v783_v24  ;;  %v912_v48 = vmax.f32 %v792_v33, 0.0  ;;  %v2712_v24 = vld [vmem:[%s3587_s4 + $0x20] sm:$0xff]  }
 0x198   :  { %v2422_v27 = vpop.f32.mrf.mxu0  ;;  %v993_v30 = vadd.f32 %v3102_v26, %v992_v25  ;;  %v1121_v49 = vmax.f32 %v1001_v34, 0.0 }
 0x199   :  { %v2470_v28 = vpop.f32.mrf.mxu1  ;;  %v795_v31 = vadd.f32 %v2422_v27, %v3102_v26  ;;  %v910_v43 = vmax.f32 %v784_v29, 0.0 }
 0x19a   :  { %v1004_v32 = vadd.f32 %v2470_v28, %v3102_v26  ;;  %v786_v35 = vpop.f32.mrf.mxu0  ;;  %v1119_v44 = vmax.f32 %v993_v30, 0.0 }
 0x19b   :  { %v995_v36 = vpop.f32.mrf.mxu1  ;;  %v787_v37 = vadd.f32 %v3102_v26, %v786_v35  ;;  %v913_v39 = vmax.f32 %v795_v31, 0.0 }
 0x19c   :  { %v996_v38 = vadd.f32 %v3102_v26, %v995_v36  ;;  %v1122_v40 = vmax.f32 %v1004_v32, 0.0  ;;  %v2425_v41 = vpop.f32.mrf.mxu0 }
 0x19d   :  { %v2473_v42 = vpop.f32.mrf.mxu1  ;;  %v911_v45 = vmax.f32 %v787_v37, 0.0  ;;  %v943_v54 = vpack.c.bf16 %v913_v39, %v912_v48  ;;  %v808_v63 = vadd.f32 %v2425_v41, %v3102_v26  ;;  %v2713_v39 = vld [vmem:[%s3587_s4 + $0x18] sm:$0xff]  }
 0x19e   :  { %v1120_v46 = vmax.f32 %v996_v38, 0.0  ;;  %v799_v50 = vpop.f32.mrf.mxu0  ;;  %v1152_v55 = vpack.c.bf16 %v1122_v40, %v1121_v49  ;;  %v1017_v0 = vadd.f32 %v2473_v42, %v3102_v26 }
 0x19f   :  { %v1008_v51 = vpop.f32.mrf.mxu1  ;;  %v942_v52 = vpack.c.bf16 %v911_v45, %v910_v43  ;;  %v800_v56 = vadd.f32 %v3102_v26, %v799_v50  ;;  %v916_v14 = vmax.f32 %v808_v63, 0.0 }
 0x1a0   :  { %v1151_v53 = vpack.c.bf16 %v1120_v46, %v1119_v44  ;;  %v2426_v57 = vpop.f32.mrf.mxu0  ;;  %v1009_v60 = vadd.f32 %v3102_v26, %v1008_v51  ;;  %v1125_v15 = vmax.f32 %v1017_v0, 0.0 }
 0x1a1   :  { %v2474_v58 = vpop.f32.mrf.mxu1  ;;  %v811_v61 = vadd.f32 %v2426_v57, %v3102_v26  ;;  %2515 = vmatprep.mubr.bf16.mxu0 %v942_v52  ;;  %v914_v10 = vmax.f32 %v800_v56, 0.0  ;;  %v2714_v56 = vld [vmem:[%s3587_s4 + $0x10] sm:$0xff]  }
 0x1a2   :  { %v1020_v62 = vadd.f32 %v2474_v58, %v3102_v26  ;;  %2563 = vmatprep.mubr.bf16.mxu1 %v1151_v53  ;;  %v802_v1 = vpop.f32.mrf.mxu0  ;;  %2516 = vmatmul.mubr.bf16.vlgmr.msra.gmra.mxu0 %v943_v54  ;;  %v1123_v11 = vmax.f32 %v1009_v60, 0.0 }
 0x1a3   :  { %v1011_v2 = vpop.f32.mrf.mxu1  ;;  %2564 = vmatmul.mubr.bf16.vlgmr.msra.gmra.mxu1 %v1152_v55  ;;  %v803_v3 = vadd.f32 %v3102_v26, %v802_v1  ;;  %2596 = vmatpush3.bf16.msra.mxu0 %v2709_v21  ;;  %v917_v5 = vmax.f32 %v811_v61, 0.0 }
 0x1a4   :  { %v1012_v4 = vadd.f32 %v3102_v26, %v1011_v2  ;;  %2644 = vmatpush3.bf16.msra.mxu1 %v2709_v21  ;;  %v1126_v6 = vmax.f32 %v1020_v62, 0.0  ;;  %v2429_v7 = vpop.f32.mrf.mxu0  ;;  %2597 = vmatprep.subr.bf16.mxu0 %v2710_v59 }
 0x1a5   :  { %v2477_v8 = vpop.f32.mrf.mxu1  ;;  %2645 = vmatprep.subr.bf16.mxu1 %v2710_v59  ;;  %v915_v12 = vmax.f32 %v803_v3, 0.0  ;;  %v945_v20 = vpack.c.bf16 %v917_v5, %v916_v14  ;;  %v824_v29 = vadd.f32 %v2429_v7, %v3102_v26 }
 0x1a6   :  { %v1124_v13 = vmax.f32 %v1012_v4, 0.0  ;;  %v815_v16 = vpop.f32.mrf.mxu0  ;;  %v1154_v47 = vpack.c.bf16 %v1126_v6, %v1125_v15  ;;  %v1033_v30 = vadd.f32 %v2477_v8, %v3102_v26  ;;  %v2715_v6 = vld [vmem:[%s3587_s4 + $0x8] sm:$0xff]  }
 0x1a7   :  { %v1024_v17 = vpop.f32.mrf.mxu1  ;;  %v944_v18 = vpack.c.bf16 %v915_v12, %v914_v10  ;;  %2598 = vmatpush3.bf16.msra.mxu0 %v2710_v59  ;;  %v816_v21 = vadd.f32 %v3102_v26, %v815_v16  ;;  %v920_v44 = vmax.f32 %v824_v29, 0.0 }
 0x1a8   :  { %v1153_v19 = vpack.c.bf16 %v1124_v13, %v1123_v11  ;;  %v2430_v22 = vpop.f32.mrf.mxu0  ;;  %2646 = vmatpush3.bf16.msra.mxu1 %v2710_v59  ;;  %2599 = vmatprep.subr.bf16.mxu0 %v2711_v9  ;;  %v1025_v25 = vadd.f32 %v3102_v26, %v1024_v17  ;;  %v1129_v45 = vmax.f32 %v1033_v30, 0.0 }
 0x1a9   :  { %v2478_v23 = vpop.f32.mrf.mxu1  ;;  %v827_v27 = vadd.f32 %v2430_v22, %v3102_v26  ;;  %2519 = vmatprep.mubr.bf16.mxu0 %v944_v18  ;;  %2647 = vmatprep.subr.bf16.mxu1 %v2711_v9  ;;  %v918_v40 = vmax.f32 %v816_v21, 0.0 }
 0x1aa   :  { %v1036_v28 = vadd.f32 %v2478_v23, %v3102_v26  ;;  %2567 = vmatprep.mubr.bf16.mxu1 %v1153_v19  ;;  %v818_v31 = vpop.f32.mrf.mxu0  ;;  %2520 = vmatmul.mubr.bf16.gmra.mxu0 %v945_v20  ;;  %v1127_v41 = vmax.f32 %v1025_v25, 0.0 }
 0x1ab   :  { %v1027_v32 = vpop.f32.mrf.mxu1  ;;  %2568 = vmatmul.mubr.bf16.gmra.mxu1 %v1154_v47  ;;  %v819_v33 = vadd.f32 %v3102_v26, %v818_v31  ;;  %2600 = vmatpush3.bf16.msra.mxu0 %v2711_v9  ;;  %v921_v35 = vmax.f32 %v827_v27, 0.0 }
 0x1ac   :  { %v1028_v34 = vadd.f32 %v3102_v26, %v1027_v32  ;;  %v1130_v36 = vmax.f32 %v1036_v28, 0.0  ;;  %v2433_v37 = vpop.f32.mrf.mxu0  ;;  %2648 = vmatpush3.bf16.msra.mxu1 %v2711_v9  ;;  %2601 = vmatprep.subr.bf16.mxu0 %v2712_v24 }
 0x1ad   :  { %v2481_v38 = vpop.f32.mrf.mxu1  ;;  %v919_v42 = vmax.f32 %v819_v33, 0.0  ;;  %2649 = vmatprep.subr.bf16.mxu1 %v2712_v24  ;;  %v947_v51 = vpack.c.bf16 %v921_v35, %v920_v44  ;;  %v840_v60 = vadd.f32 %v2433_v37, %v3102_v26 }
 0x1ae   :  { %v1128_v43 = vmax.f32 %v1028_v34, 0.0  ;;  %v831_v46 = vpop.f32.mrf.mxu0  ;;  %v1156_v52 = vpack.c.bf16 %v1130_v36, %v1129_v45  ;;  %v1049_v61 = vadd.f32 %v2481_v38, %v3102_v26 }
 0x1af   :  { %v1040_v48 = vpop.f32.mrf.mxu1  ;;  %v946_v49 = vpack.c.bf16 %v919_v42, %v918_v40  ;;  %2602 = vmatpush3.bf16.msra.mxu0 %v2712_v24  ;;  %v832_v53 = vadd.f32 %v3102_v26, %v831_v46  ;;  %v924_v11 = vmax.f32 %v840_v60, 0.0 }
 0x1b0   :  { %v1155_v50 = vpack.c.bf16 %v1128_v43, %v1127_v41  ;;  %v2434_v54 = vpop.f32.mrf.mxu0  ;;  %2650 = vmatpush3.bf16.msra.mxu1 %v2712_v24  ;;  %2603 = vmatprep.subr.bf16.mxu0 %v2713_v39  ;;  %v1041_v57 = vadd.f32 %v3102_v26, %v1040_v48  ;;  %v1133_v12 = vmax.f32 %v1049_v61, 0.0 }
 0x1b1   :  { %v2482_v55 = vpop.f32.mrf.mxu1  ;;  %v843_v58 = vadd.f32 %v2434_v54, %v3102_v26  ;;  %2523 = vmatprep.mubr.bf16.mxu0 %v946_v49  ;;  %2651 = vmatprep.subr.bf16.mxu1 %v2713_v39  ;;  %v922_v7 = vmax.f32 %v832_v53, 0.0 }
 0x1b2   :  { %v1052_v59 = vadd.f32 %v2482_v55, %v3102_v26  ;;  %2571 = vmatprep.mubr.bf16.mxu1 %v1155_v50  ;;  %v834_v62 = vpop.f32.mrf.mxu0  ;;  %2524 = vmatmul.mubr.bf16.gmra.mxu0 %v947_v51  ;;  %v1131_v8 = vmax.f32 %v1041_v57, 0.0 }
 0x1b3   :  { %v1043_v63 = vpop.f32.mrf.mxu1  ;;  %2572 = vmatmul.mubr.bf16.gmra.mxu1 %v1156_v52  ;;  %v835_v0 = vadd.f32 %v3102_v26, %v834_v62  ;;  %2604 = vmatpush3.bf16.msra.mxu0 %v2713_v39  ;;  %v925_v2 = vmax.f32 %v843_v58, 0.0 }
 0x1b4   :  { %v1044_v1 = vadd.f32 %v3102_v26, %v1043_v63  ;;  %v1134_v3 = vmax.f32 %v1052_v59, 0.0  ;;  %v2437_v4 = vpop.f32.mrf.mxu0  ;;  %2652 = vmatpush3.bf16.msra.mxu1 %v2713_v39  ;;  %2605 = vmatprep.subr.bf16.mxu0 %v2714_v56 }
 0x1b5   :  { %v2485_v5 = vpop.f32.mrf.mxu1  ;;  %v923_v9 = vmax.f32 %v835_v0, 0.0  ;;  %2653 = vmatprep.subr.bf16.mxu1 %v2714_v56  ;;  %v949_v17 = vpack.c.bf16 %v925_v2, %v924_v11  ;;  %v856_v24 = vadd.f32 %v2437_v4, %v3102_v26 }
 0x1b6   :  { %v1132_v10 = vmax.f32 %v1044_v1, 0.0  ;;  %v847_v13 = vpop.f32.mrf.mxu0  ;;  %v1158_v18 = vpack.c.bf16 %v1134_v3, %v1133_v12  ;;  %v1065_v25 = vadd.f32 %v2485_v5, %v3102_v26 }
 0x1b7   :  { %v1056_v14 = vpop.f32.mrf.mxu1  ;;  %v948_v15 = vpack.c.bf16 %v923_v9, %v922_v7  ;;  %2606 = vmatpush3.bf16.msra.mxu0 %v2714_v56  ;;  %v848_v19 = vadd.f32 %v3102_v26, %v847_v13  ;;  %v928_v39 = vmax.f32 %v856_v24, 0.0 }
 0x1b8   :  { %v1157_v16 = vpack.c.bf16 %v1132_v10, %v1131_v8  ;;  %v2438_v20 = vpop.f32.mrf.mxu0  ;;  %2654 = vmatpush3.bf16.msra.mxu1 %v2714_v56  ;;  %2607 = vmatprep.subr.bf16.mxu0 %v2715_v6  ;;  %v1057_v21 = vadd.f32 %v3102_v26, %v1056_v14  ;;  %v1137_v40 = vmax.f32 %v1065_v25, 0.0 }
 0x1b9   :  { %v2486_v47 = vpop.f32.mrf.mxu1  ;;  %v859_v22 = vadd.f32 %v2438_v20, %v3102_v26  ;;  %2527 = vmatprep.mubr.bf16.mxu0 %v948_v15  ;;  %2655 = vmatprep.subr.bf16.mxu1 %v2715_v6  ;;  %v926_v35 = vmax.f32 %v848_v19, 0.0 }
 0x1ba   :  { %v1068_v23 = vadd.f32 %v2486_v47, %v3102_v26  ;;  %2575 = vmatprep.mubr.bf16.mxu1 %v1157_v16  ;;  %v850_v27 = vpop.f32.mrf.mxu0  ;;  %2528 = vmatmul.mubr.bf16.gmra.mxu0 %v949_v17  ;;  %v1135_v36 = vmax.f32 %v1057_v21, 0.0 }
 0x1bb   :  { %v1059_v28 = vpop.f32.mrf.mxu1  ;;  %2576 = vmatmul.mubr.bf16.gmra.mxu1 %v1158_v18  ;;  %v851_v29 = vadd.f32 %v3102_v26, %v850_v27  ;;  %2608 = vmatpush3.bf16.msra.mxu0 %v2715_v6  ;;  %v929_v31 = vmax.f32 %v859_v22, 0.0 }
 0x1bc   :  { %v1060_v30 = vadd.f32 %v3102_v26, %v1059_v28  ;;  %v1138_v32 = vmax.f32 %v1068_v23, 0.0  ;;  %v2441_v33 = vpop.f32.mrf.mxu0  ;;  %2656 = vmatpush3.bf16.msra.mxu1 %v2715_v6 }
 0x1bd   :  { %v2489_v34 = vpop.f32.mrf.mxu1  ;;  %v927_v37 = vmax.f32 %v851_v29, 0.0  ;;  %v951_v45 = vpack.c.bf16 %v929_v31, %v928_v39  ;;  %v872_v54 = vadd.f32 %v2441_v33, %v3102_v26 }
 0x1be   :  { %v1136_v38 = vmax.f32 %v1060_v30, 0.0  ;;  %v863_v41 = vpop.f32.mrf.mxu0  ;;  %v1160_v46 = vpack.c.bf16 %v1138_v32, %v1137_v40  ;;  %v1081_v55 = vadd.f32 %v2489_v34, %v3102_v26 }
 0x1bf   :  { %v1072_v42 = vpop.f32.mrf.mxu1  ;;  %v950_v43 = vpack.c.bf16 %v927_v37, %v926_v35  ;;  %v864_v48 = vadd.f32 %v3102_v26, %v863_v41  ;;  %v932_v4 = vmax.f32 %v872_v54, 0.0 }
 0x1c0   :  { %v1159_v44 = vpack.c.bf16 %v1136_v38, %v1135_v36  ;;  %v2442_v49 = vpop.f32.mrf.mxu0  ;;  %v1073_v51 = vadd.f32 %v3102_v26, %v1072_v42  ;;  %v1141_v5 = vmax.f32 %v1081_v55, 0.0 }
 0x1c1   :  { %v2490_v50 = vpop.f32.mrf.mxu1  ;;  %v875_v52 = vadd.f32 %v2442_v49, %v3102_v26  ;;  %2531 = vmatprep.mubr.bf16.mxu0 %v950_v43  ;;  %v930_v0 = vmax.f32 %v864_v48, 0.0 }
 0x1c2   :  { %v1084_v53 = vadd.f32 %v2490_v50, %v3102_v26  ;;  %2579 = vmatprep.mubr.bf16.mxu1 %v1159_v44  ;;  %v866_v56 = vpop.f32.mrf.mxu0  ;;  %2532 = vmatmul.mubr.bf16.gmra.mxu0 %v951_v45  ;;  %v1139_v1 = vmax.f32 %v1073_v51, 0.0 }
 0x1c3   :  { %v1075_v57 = vpop.f32.mrf.mxu1  ;;  %2580 = vmatmul.mubr.bf16.gmra.mxu1 %v1160_v46  ;;  %v867_v58 = vadd.f32 %v3102_v26, %v866_v56  ;;  %v933_v60 = vmax.f32 %v875_v52, 0.0 }
 0x1c4   :  { %v1076_v59 = vadd.f32 %v3102_v26, %v1075_v57  ;;  %v1142_v61 = vmax.f32 %v1084_v53, 0.0  ;;  %v2445_v62 = vpop.f32.mrf.mxu0 }
 0x1c5   :  { %v2493_v63 = vpop.f32.mrf.mxu1  ;;  %v931_v2 = vmax.f32 %v867_v58, 0.0  ;;  %v953_v10 = vpack.c.bf16 %v933_v60, %v932_v4  ;;  %v888_v18 = vadd.f32 %v2445_v62, %v3102_v26 }
 0x1c6   :  { %v1140_v3 = vmax.f32 %v1076_v59, 0.0  ;;  %v879_v6 = vpop.f32.mrf.mxu0  ;;  %v1162_v11 = vpack.c.bf16 %v1142_v61, %v1141_v5  ;;  %v1097_v19 = vadd.f32 %v2493_v63, %v3102_v26  ;;  %v3192_v5 = vld [vmem:[%s3586_s2 + $0x2] ss:$0 sm:$0xff] }
 0x1c7   :  { %v1088_v7 = vpop.f32.mrf.mxu1  ;;  %v952_v8 = vpack.c.bf16 %v931_v2, %v930_v0  ;;  %v880_v12 = vadd.f32 %v3102_v26, %v879_v6  ;;  %v936_v32 = vmax.f32 %v888_v18, 0.0 }
 0x1c8   :  { %v1161_v9 = vpack.c.bf16 %v1140_v3, %v1139_v1  ;;  %v2446_v13 = vpop.f32.mrf.mxu0  ;;  %v1089_v15 = vadd.f32 %v3102_v26, %v1088_v7  ;;  %v1145_v33 = vmax.f32 %v1097_v19, 0.0 }
 0x1c9   :  { %v2494_v14 = vpop.f32.mrf.mxu1  ;;  %v891_v16 = vadd.f32 %v2446_v13, %v3102_v26  ;;  %2535 = vmatprep.mubr.bf16.mxu0 %v952_v8  ;;  %v934_v28 = vmax.f32 %v880_v12, 0.0 }
 0x1ca   :  { %v1100_v17 = vadd.f32 %v2494_v14, %v3102_v26  ;;  %2583 = vmatprep.mubr.bf16.mxu1 %v1161_v9  ;;  %v882_v20 = vpop.f32.mrf.mxu0  ;;  %2536 = vmatmul.mubr.bf16.gmra.mxu0 %v953_v10  ;;  %v1143_v29 = vmax.f32 %v1089_v15, 0.0 }
 0x1cb   :  { %v1091_v47 = vpop.f32.mrf.mxu1  ;;  %2584 = vmatmul.mubr.bf16.gmra.mxu1 %v1162_v11  ;;  %v883_v21 = vadd.f32 %v3102_v26, %v882_v20  ;;  %v937_v23 = vmax.f32 %v891_v16, 0.0 }
 0x1cc   :  { %v1092_v22 = vadd.f32 %v3102_v26, %v1091_v47  ;;  %v1146_v24 = vmax.f32 %v1100_v17, 0.0  ;;  %v2449_v25 = vpop.f32.mrf.mxu0 }
 0x1cd   :  { %v2497_v27 = vpop.f32.mrf.mxu1  ;;  %v935_v30 = vmax.f32 %v883_v21, 0.0  ;;  %v955_v38 = vpack.c.bf16 %v937_v23, %v936_v32  ;;  %v904_v46 = vadd.f32 %v2449_v25, %v3102_v26 }
 0x1ce   :  { %v1144_v31 = vmax.f32 %v1092_v22, 0.0  ;;  %v895_v34 = vpop.f32.mrf.mxu0  ;;  %v1164_v39 = vpack.c.bf16 %v1146_v24, %v1145_v33  ;;  %v1113_v48 = vadd.f32 %v2497_v27, %v3102_v26 }
 0x1cf   :  { %v1104_v35 = vpop.f32.mrf.mxu1  ;;  %v954_v36 = vpack.c.bf16 %v935_v30, %v934_v28  ;;  %v896_v40 = vadd.f32 %v3102_v26, %v895_v34  ;;  %v940_v59 = vmax.f32 %v904_v46, 0.0 }
 0x1d0   :  { %v1163_v37 = vpack.c.bf16 %v1144_v31, %v1143_v29  ;;  %v2450_v41 = vpop.f32.mrf.mxu0  ;;  %v1105_v43 = vadd.f32 %v3102_v26, %v1104_v35  ;;  %v1149_v60 = vmax.f32 %v1113_v48, 0.0 }
 0x1d1   :  { %v2498_v42 = vpop.f32.mrf.mxu1  ;;  %v907_v44 = vadd.f32 %v2450_v41, %v3102_v26  ;;  %2539 = vmatprep.mubr.bf16.mxu0 %v954_v36  ;;  %v938_v55 = vmax.f32 %v896_v40, 0.0 }
 0x1d2   :  { %v1116_v45 = vadd.f32 %v2498_v42, %v3102_v26  ;;  %2587 = vmatprep.mubr.bf16.mxu1 %v1163_v37  ;;  %v898_v49 = vpop.f32.mrf.mxu0  ;;  %2540 = vmatmul.mubr.bf16.gmra.mxu0 %v955_v38  ;;  %v1147_v56 = vmax.f32 %v1105_v43, 0.0 }
 0x1d3   :  { %v1107_v50 = vpop.f32.mrf.mxu1  ;;  %2588 = vmatmul.mubr.bf16.gmra.mxu1 %v1164_v39  ;;  %v899_v51 = vadd.f32 %v3102_v26, %v898_v49  ;;  %v941_v53 = vmax.f32 %v907_v44, 0.0 }
 0x1d4   :  { %v1108_v52 = vadd.f32 %v3102_v26, %v1107_v50  ;;  %v1150_v54 = vmax.f32 %v1116_v45, 0.0  ;;  %v2716_v26 = vld [vmem:[%s3587_s4] sm:$0xff]  }
 0x1d5   :  { %v939_v57 = vmax.f32 %v899_v51, 0.0  ;;  %v957_v63 = vpack.c.bf16 %v941_v53, %v940_v59  ;;  %2609 = vmatprep.subr.bf16.mxu0 %v2716_v26  ;;  %2657 = vmatprep.subr.bf16.mxu1 %v2716_v26 }
 0x1d6   :  { %v1148_v58 = vmax.f32 %v1108_v52, 0.0  ;;  %v1166_v0 = vpack.c.bf16 %v1150_v54, %v1149_v60  ;;  %2610 = vmatpush3.bf16.msra.mxu0 %v2716_v26  ;;  %2658 = vmatpush3.bf16.msra.mxu1 %v2716_v26 }
 0x1d7   :  { %v956_v61 = vpack.c.bf16 %v939_v57, %v938_v55 }
 0x1d8   :  { %v1165_v62 = vpack.c.bf16 %v1148_v58, %v1147_v56 }
 0x1d9   :  { %2543 = vmatprep.mubr.bf16.mxu0 %v956_v61 }
 0x1da   :  { %2591 = vmatprep.mubr.bf16.mxu1 %v1165_v62  ;;  %2544 = vmatmul.mubr.bf16.gmra.mxu0 %v957_v63 }
 0x1db   :  { %2592 = vmatmul.mubr.bf16.gmra.mxu1 %v1166_v0 }
 0x262   :  { %v2517_v1 = vpop.f32.mrf.mxu0 }
 0x263   :  { %v2565_v2 = vpop.f32.mrf.mxu1  ;;  %v1262_v12 = vadd.f32 %v2517_v1, %v3192_v5 }
 0x264   :  { %v1253_v3 = vpop.f32.mrf.mxu0  ;;  %v1471_v13 = vadd.f32 %v2565_v2, %v3192_v5 }
 0x265   :  { %v1462_v4 = vpop.f32.mrf.mxu1  ;;  %v1254_v8 = vadd.f32 %v3192_v5, %v1253_v3  ;;  %v1382_v25 = vmax.f32 %v1262_v12, 0.0 }
 0x266   :  { %v2518_v6 = vpop.f32.mrf.mxu0  ;;  %v1463_v9 = vadd.f32 %v3192_v5, %v1462_v4  ;;  %v1591_v27 = vmax.f32 %v1471_v13, 0.0 }
 0x267   :  { %v2566_v7 = vpop.f32.mrf.mxu1  ;;  %v1265_v10 = vadd.f32 %v2518_v6, %v3192_v5  ;;  %v1380_v21 = vmax.f32 %v1254_v8, 0.0 }
 0x268   :  { %v1474_v11 = vadd.f32 %v2566_v7, %v3192_v5  ;;  %v1256_v14 = vpop.f32.mrf.mxu0  ;;  %v1589_v22 = vmax.f32 %v1463_v9, 0.0 }
 0x269   :  { %v1465_v15 = vpop.f32.mrf.mxu1  ;;  %v1257_v16 = vadd.f32 %v3192_v5, %v1256_v14  ;;  %v1383_v18 = vmax.f32 %v1265_v10, 0.0 }
 0x26a   :  { %v1466_v17 = vadd.f32 %v3192_v5, %v1465_v15  ;;  %v1592_v19 = vmax.f32 %v1474_v11, 0.0  ;;  %v2521_v20 = vpop.f32.mrf.mxu0 }
 0x26b   :  { %v2569_v47 = vpop.f32.mrf.mxu1  ;;  %v1381_v23 = vmax.f32 %v1257_v16, 0.0  ;;  %v1413_v32 = vpack.c.bf16 %v1383_v18, %v1382_v25  ;;  %v1278_v40 = vadd.f32 %v2521_v20, %v3192_v5 }
 0x26c   :  { %v1590_v24 = vmax.f32 %v1466_v17, 0.0  ;;  %v1269_v28 = vpop.f32.mrf.mxu0  ;;  %v1622_v33 = vpack.c.bf16 %v1592_v19, %v1591_v27  ;;  %v1487_v41 = vadd.f32 %v2569_v47, %v3192_v5 }
 0x26d   :  { %v1478_v29 = vpop.f32.mrf.mxu1  ;;  %v1412_v30 = vpack.c.bf16 %v1381_v23, %v1380_v21  ;;  %v1270_v34 = vadd.f32 %v3192_v5, %v1269_v28  ;;  %v1386_v55 = vmax.f32 %v1278_v40, 0.0 }
 0x26e   :  { %v1621_v31 = vpack.c.bf16 %v1590_v24, %v1589_v22  ;;  %v2522_v35 = vpop.f32.mrf.mxu0  ;;  %v1479_v37 = vadd.f32 %v3192_v5, %v1478_v29  ;;  %v1595_v56 = vmax.f32 %v1487_v41, 0.0 }
 0x26f   :  { %v2570_v36 = vpop.f32.mrf.mxu1  ;;  %v1281_v38 = vadd.f32 %v2522_v35, %v3192_v5  ;;  %2611 = vmatprep.mubr.bf16.mxu0 %v1412_v30  ;;  %v1384_v51 = vmax.f32 %v1270_v34, 0.0 }
 0x270   :  { %v1490_v39 = vadd.f32 %v2570_v36, %v3192_v5  ;;  %2659 = vmatprep.mubr.bf16.mxu1 %v1621_v31  ;;  %v1272_v42 = vpop.f32.mrf.mxu0  ;;  %2612 = vmatmul.mubr.bf16.vlgmr.msra.gmra.mxu0 %v1413_v32  ;;  %v1593_v52 = vmax.f32 %v1479_v37, 0.0 }
 0x271   :  { %v1481_v43 = vpop.f32.mrf.mxu1  ;;  %2660 = vmatmul.mubr.bf16.vlgmr.msra.gmra.mxu1 %v1622_v33  ;;  %v1273_v44 = vadd.f32 %v3192_v5, %v1272_v42  ;;  %v1387_v46 = vmax.f32 %v1281_v38, 0.0 }
 0x272   :  { %v1482_v45 = vadd.f32 %v3192_v5, %v1481_v43  ;;  %v1596_v48 = vmax.f32 %v1490_v39, 0.0  ;;  %v2525_v49 = vpop.f32.mrf.mxu0 }
 0x273   :  { %v2573_v50 = vpop.f32.mrf.mxu1  ;;  %v1385_v53 = vmax.f32 %v1273_v44, 0.0  ;;  %v1415_v61 = vpack.c.bf16 %v1387_v46, %v1386_v55  ;;  %v1294_v4 = vadd.f32 %v2525_v49, %v3192_v5 }
 0x274   :  { %v1594_v54 = vmax.f32 %v1482_v45, 0.0  ;;  %v1285_v57 = vpop.f32.mrf.mxu0  ;;  %v1624_v62 = vpack.c.bf16 %v1596_v48, %v1595_v56  ;;  %v1503_v6 = vadd.f32 %v2573_v50, %v3192_v5 }
 0x275   :  { %v1494_v58 = vpop.f32.mrf.mxu1  ;;  %v1414_v59 = vpack.c.bf16 %v1385_v53, %v1384_v51  ;;  %v1286_v63 = vadd.f32 %v3192_v5, %v1285_v57  ;;  %v1390_v19 = vmax.f32 %v1294_v4, 0.0 }
 0x276   :  { %v1623_v60 = vpack.c.bf16 %v1594_v54, %v1593_v52  ;;  %v2526_v0 = vpop.f32.mrf.mxu0  ;;  %v1495_v1 = vadd.f32 %v3192_v5, %v1494_v58  ;;  %v1599_v20 = vmax.f32 %v1503_v6, 0.0 }
 0x277   :  { %v2574_v26 = vpop.f32.mrf.mxu1  ;;  %v1297_v2 = vadd.f32 %v2526_v0, %v3192_v5  ;;  %2615 = vmatprep.mubr.bf16.mxu0 %v1414_v59  ;;  %v1388_v15 = vmax.f32 %v1286_v63, 0.0 }
 0x278   :  { %v1506_v3 = vadd.f32 %v2574_v26, %v3192_v5  ;;  %2663 = vmatprep.mubr.bf16.mxu1 %v1623_v60  ;;  %v1288_v7 = vpop.f32.mrf.mxu0  ;;  %2616 = vmatmul.mubr.bf16.gmra.mxu0 %v1415_v61  ;;  %v1597_v16 = vmax.f32 %v1495_v1, 0.0 }
 0x279   :  { %v1497_v8 = vpop.f32.mrf.mxu1  ;;  %2664 = vmatmul.mubr.bf16.gmra.mxu1 %v1624_v62  ;;  %v1289_v9 = vadd.f32 %v3192_v5, %v1288_v7  ;;  %v1391_v11 = vmax.f32 %v1297_v2, 0.0 }
 0x27a   :  { %v1498_v10 = vadd.f32 %v3192_v5, %v1497_v8  ;;  %v1600_v12 = vmax.f32 %v1506_v3, 0.0  ;;  %v2529_v13 = vpop.f32.mrf.mxu0 }
 0x27b   :  { %v2577_v14 = vpop.f32.mrf.mxu1  ;;  %v1389_v17 = vmax.f32 %v1289_v9, 0.0  ;;  %v1417_v24 = vpack.c.bf16 %v1391_v11, %v1390_v19  ;;  %v1310_v33 = vadd.f32 %v2529_v13, %v3192_v5 }
 0x27c   :  { %v1598_v18 = vmax.f32 %v1498_v10, 0.0  ;;  %v1301_v47 = vpop.f32.mrf.mxu0  ;;  %v1626_v25 = vpack.c.bf16 %v1600_v12, %v1599_v20  ;;  %v1519_v34 = vadd.f32 %v2577_v14, %v3192_v5 }
 0x27d   :  { %v1510_v21 = vpop.f32.mrf.mxu1  ;;  %v1416_v22 = vpack.c.bf16 %v1389_v17, %v1388_v15  ;;  %v1302_v27 = vadd.f32 %v3192_v5, %v1301_v47  ;;  %v1394_v48 = vmax.f32 %v1310_v33, 0.0 }
 0x27e   :  { %v1625_v23 = vpack.c.bf16 %v1598_v18, %v1597_v16  ;;  %v2530_v28 = vpop.f32.mrf.mxu0  ;;  %v1511_v30 = vadd.f32 %v3192_v5, %v1510_v21  ;;  %v1603_v49 = vmax.f32 %v1519_v34, 0.0 }
 0x27f   :  { %v2578_v29 = vpop.f32.mrf.mxu1  ;;  %v1313_v31 = vadd.f32 %v2530_v28, %v3192_v5  ;;  %2619 = vmatprep.mubr.bf16.mxu0 %v1416_v22  ;;  %v1392_v43 = vmax.f32 %v1302_v27, 0.0 }
 0x280   :  { %v1522_v32 = vadd.f32 %v2578_v29, %v3192_v5  ;;  %2667 = vmatprep.mubr.bf16.mxu1 %v1625_v23  ;;  %v1304_v35 = vpop.f32.mrf.mxu0  ;;  %2620 = vmatmul.mubr.bf16.gmra.mxu0 %v1417_v24  ;;  %v1601_v44 = vmax.f32 %v1511_v30, 0.0 }
 0x281   :  { %v1513_v36 = vpop.f32.mrf.mxu1  ;;  %2668 = vmatmul.mubr.bf16.gmra.mxu1 %v1626_v25  ;;  %v1305_v37 = vadd.f32 %v3192_v5, %v1304_v35  ;;  %v1395_v39 = vmax.f32 %v1313_v31, 0.0 }
 0x282   :  { %v1514_v38 = vadd.f32 %v3192_v5, %v1513_v36  ;;  %v1604_v40 = vmax.f32 %v1522_v32, 0.0  ;;  %v2533_v41 = vpop.f32.mrf.mxu0 }
 0x283   :  { %v2581_v42 = vpop.f32.mrf.mxu1  ;;  %v1393_v45 = vmax.f32 %v1305_v37, 0.0  ;;  %v1419_v54 = vpack.c.bf16 %v1395_v39, %v1394_v48  ;;  %v1326_v62 = vadd.f32 %v2533_v41, %v3192_v5 }
 0x284   :  { %v1602_v46 = vmax.f32 %v1514_v38, 0.0  ;;  %v1317_v50 = vpop.f32.mrf.mxu0  ;;  %v1628_v55 = vpack.c.bf16 %v1604_v40, %v1603_v49  ;;  %v1535_v63 = vadd.f32 %v2581_v42, %v3192_v5 }
 0x285   :  { %v1526_v51 = vpop.f32.mrf.mxu1  ;;  %v1418_v52 = vpack.c.bf16 %v1393_v45, %v1392_v43  ;;  %v1318_v56 = vadd.f32 %v3192_v5, %v1317_v50  ;;  %v1398_v12 = vmax.f32 %v1326_v62, 0.0 }
 0x286   :  { %v1627_v53 = vpack.c.bf16 %v1602_v46, %v1601_v44  ;;  %v2534_v57 = vpop.f32.mrf.mxu0  ;;  %v1527_v59 = vadd.f32 %v3192_v5, %v1526_v51  ;;  %v1607_v13 = vmax.f32 %v1535_v63, 0.0 }
 0x287   :  { %v2582_v58 = vpop.f32.mrf.mxu1  ;;  %v1329_v60 = vadd.f32 %v2534_v57, %v3192_v5  ;;  %2623 = vmatprep.mubr.bf16.mxu0 %v1418_v52  ;;  %v1396_v8 = vmax.f32 %v1318_v56, 0.0 }
 0x288   :  { %v1538_v61 = vadd.f32 %v2582_v58, %v3192_v5  ;;  %2671 = vmatprep.mubr.bf16.mxu1 %v1627_v53  ;;  %v1320_v0 = vpop.f32.mrf.mxu0  ;;  %2624 = vmatmul.mubr.bf16.gmra.mxu0 %v1419_v54  ;;  %v1605_v9 = vmax.f32 %v1527_v59, 0.0 }
 0x289   :  { %v1529_v26 = vpop.f32.mrf.mxu1  ;;  %2672 = vmatmul.mubr.bf16.gmra.mxu1 %v1628_v55  ;;  %v1321_v1 = vadd.f32 %v3192_v5, %v1320_v0  ;;  %v1399_v3 = vmax.f32 %v1329_v60, 0.0 }
 0x28a   :  { %v1530_v2 = vadd.f32 %v3192_v5, %v1529_v26  ;;  %v1608_v4 = vmax.f32 %v1538_v61, 0.0  ;;  %v2537_v6 = vpop.f32.mrf.mxu0 }
 0x28b   :  { %v2585_v7 = vpop.f32.mrf.mxu1  ;;  %v1397_v10 = vmax.f32 %v1321_v1, 0.0  ;;  %v1421_v18 = vpack.c.bf16 %v1399_v3, %v1398_v12  ;;  %v1342_v25 = vadd.f32 %v2537_v6, %v3192_v5 }
 0x28c   :  { %v1606_v11 = vmax.f32 %v1530_v2, 0.0  ;;  %v1333_v14 = vpop.f32.mrf.mxu0  ;;  %v1630_v19 = vpack.c.bf16 %v1608_v4, %v1607_v13  ;;  %v1551_v27 = vadd.f32 %v2585_v7, %v3192_v5 }
 0x28d   :  { %v1542_v15 = vpop.f32.mrf.mxu1  ;;  %v1420_v16 = vpack.c.bf16 %v1397_v10, %v1396_v8  ;;  %v1334_v20 = vadd.f32 %v3192_v5, %v1333_v14  ;;  %v1402_v40 = vmax.f32 %v1342_v25, 0.0 }
 0x28e   :  { %v1629_v17 = vpack.c.bf16 %v1606_v11, %v1605_v9  ;;  %v2538_v47 = vpop.f32.mrf.mxu0  ;;  %v1543_v22 = vadd.f32 %v3192_v5, %v1542_v15  ;;  %v1611_v41 = vmax.f32 %v1551_v27, 0.0 }
 0x28f   :  { %v2586_v21 = vpop.f32.mrf.mxu1  ;;  %v1345_v23 = vadd.f32 %v2538_v47, %v3192_v5  ;;  %2627 = vmatprep.mubr.bf16.mxu0 %v1420_v16  ;;  %v1400_v36 = vmax.f32 %v1334_v20, 0.0 }
 0x290   :  { %v1554_v24 = vadd.f32 %v2586_v21, %v3192_v5  ;;  %2675 = vmatprep.mubr.bf16.mxu1 %v1629_v17  ;;  %v1336_v28 = vpop.f32.mrf.mxu0  ;;  %2628 = vmatmul.mubr.bf16.gmra.mxu0 %v1421_v18  ;;  %v1609_v37 = vmax.f32 %v1543_v22, 0.0 }
 0x291   :  { %v1545_v29 = vpop.f32.mrf.mxu1  ;;  %2676 = vmatmul.mubr.bf16.gmra.mxu1 %v1630_v19  ;;  %v1337_v30 = vadd.f32 %v3192_v5, %v1336_v28  ;;  %v1403_v32 = vmax.f32 %v1345_v23, 0.0 }
 0x292   :  { %v1546_v31 = vadd.f32 %v3192_v5, %v1545_v29  ;;  %v1612_v33 = vmax.f32 %v1554_v24, 0.0  ;;  %v2541_v34 = vpop.f32.mrf.mxu0 }
 0x293   :  { %v2589_v35 = vpop.f32.mrf.mxu1  ;;  %v1401_v38 = vmax.f32 %v1337_v30, 0.0  ;;  %v1423_v46 = vpack.c.bf16 %v1403_v32, %v1402_v40  ;;  %v1358_v55 = vadd.f32 %v2541_v34, %v3192_v5 }
 0x294   :  { %v1610_v39 = vmax.f32 %v1546_v31, 0.0  ;;  %v1349_v42 = vpop.f32.mrf.mxu0  ;;  %v1632_v48 = vpack.c.bf16 %v1612_v33, %v1611_v41  ;;  %v1567_v56 = vadd.f32 %v2589_v35, %v3192_v5 }
 0x295   :  { %v1558_v43 = vpop.f32.mrf.mxu1  ;;  %v1422_v44 = vpack.c.bf16 %v1401_v38, %v1400_v36  ;;  %v1350_v49 = vadd.f32 %v3192_v5, %v1349_v42  ;;  %v1406_v4 = vmax.f32 %v1358_v55, 0.0 }
 0x296   :  { %v1631_v45 = vpack.c.bf16 %v1610_v39, %v1609_v37  ;;  %v2542_v50 = vpop.f32.mrf.mxu0  ;;  %v1559_v52 = vadd.f32 %v3192_v5, %v1558_v43  ;;  %v1615_v6 = vmax.f32 %v1567_v56, 0.0 }
 0x297   :  { %v2590_v51 = vpop.f32.mrf.mxu1  ;;  %v1361_v53 = vadd.f32 %v2542_v50, %v3192_v5  ;;  %2631 = vmatprep.mubr.bf16.mxu0 %v1422_v44  ;;  %v1404_v26 = vmax.f32 %v1350_v49, 0.0 }
 0x298   :  { %v1570_v54 = vadd.f32 %v2590_v51, %v3192_v5  ;;  %2679 = vmatprep.mubr.bf16.mxu1 %v1631_v45  ;;  %v1352_v57 = vpop.f32.mrf.mxu0  ;;  %2632 = vmatmul.mubr.bf16.gmra.mxu0 %v1423_v46  ;;  %v1613_v1 = vmax.f32 %v1559_v52, 0.0 }
 0x299   :  { %v1561_v58 = vpop.f32.mrf.mxu1  ;;  %2680 = vmatmul.mubr.bf16.gmra.mxu1 %v1632_v48  ;;  %v1353_v59 = vadd.f32 %v3192_v5, %v1352_v57  ;;  %v1407_v61 = vmax.f32 %v1361_v53, 0.0 }
 0x29a   :  { %v1562_v60 = vadd.f32 %v3192_v5, %v1561_v58  ;;  %v1616_v62 = vmax.f32 %v1570_v54, 0.0  ;;  %v2545_v63 = vpop.f32.mrf.mxu0 }
 0x29b   :  { %v2593_v0 = vpop.f32.mrf.mxu1  ;;  %v1405_v2 = vmax.f32 %v1353_v59, 0.0  ;;  %v1425_v11 = vpack.c.bf16 %v1407_v61, %v1406_v4  ;;  %v1374_v19 = vadd.f32 %v2545_v63, %v3192_v5 }
 0x29c   :  { %v1614_v3 = vmax.f32 %v1562_v60, 0.0  ;;  %v1365_v7 = vpop.f32.mrf.mxu0  ;;  %v1634_v12 = vpack.c.bf16 %v1616_v62, %v1615_v6  ;;  %v1583_v20 = vadd.f32 %v2593_v0, %v3192_v5 }
 0x29d   :  { %v1574_v8 = vpop.f32.mrf.mxu1  ;;  %v1424_v9 = vpack.c.bf16 %v1405_v2, %v1404_v26  ;;  %v1366_v13 = vadd.f32 %v3192_v5, %v1365_v7  ;;  %v1410_v31 = vmax.f32 %v1374_v19, 0.0 }
 0x29e   :  { %v1633_v10 = vpack.c.bf16 %v1614_v3, %v1613_v1  ;;  %v2546_v14 = vpop.f32.mrf.mxu0  ;;  %v1575_v16 = vadd.f32 %v3192_v5, %v1574_v8  ;;  %v1619_v32 = vmax.f32 %v1583_v20, 0.0 }
 0x29f   :  { %v2594_v15 = vpop.f32.mrf.mxu1  ;;  %v1377_v17 = vadd.f32 %v2546_v14, %v3192_v5  ;;  %2635 = vmatprep.mubr.bf16.mxu0 %v1424_v9  ;;  %v1408_v27 = vmax.f32 %v1366_v13, 0.0 }
 0x2a0   :  { %v1586_v18 = vadd.f32 %v2594_v15, %v3192_v5  ;;  %2683 = vmatprep.mubr.bf16.mxu1 %v1633_v10  ;;  %v1368_v47 = vpop.f32.mrf.mxu0  ;;  %2636 = vmatmul.mubr.bf16.gmra.mxu0 %v1425_v11  ;;  %v1617_v28 = vmax.f32 %v1575_v16, 0.0 }
 0x2a1   :  { %v1577_v21 = vpop.f32.mrf.mxu1  ;;  %2684 = vmatmul.mubr.bf16.gmra.mxu1 %v1634_v12  ;;  %v1369_v22 = vadd.f32 %v3192_v5, %v1368_v47  ;;  %v1411_v24 = vmax.f32 %v1377_v17, 0.0 }
 0x2a2   :  { %v1578_v23 = vadd.f32 %v3192_v5, %v1577_v21  ;;  %v1620_v25 = vmax.f32 %v1586_v18, 0.0  ;;  %v3261_v5 = vld [vmem:[%s3588_s5] ss:$0 sm:$0xff] }
 0x2a3   :  { %v1409_v29 = vmax.f32 %v1369_v22, 0.0  ;;  %v1427_v35 = vpack.c.bf16 %v1411_v24, %v1410_v31 }
 0x2a4   :  { %v1618_v30 = vmax.f32 %v1578_v23, 0.0  ;;  %v1636_v36 = vpack.c.bf16 %v1620_v25, %v1619_v32 }
 0x2a5   :  { %v1426_v33 = vpack.c.bf16 %v1409_v29, %v1408_v27 }
 0x2a6   :  { %v1635_v34 = vpack.c.bf16 %v1618_v30, %v1617_v28 }
 0x2a7   :  { %2639 = vmatprep.mubr.bf16.mxu0 %v1426_v33 }
 0x2a8   :  { %2687 = vmatprep.mubr.bf16.mxu1 %v1635_v34  ;;  %2640 = vmatmul.mubr.bf16.gmra.mxu0 %v1427_v35 }
 0x2a9   :  { %2688 = vmatmul.mubr.bf16.gmra.mxu1 %v1636_v36 }
 0x330   :  { %v2613_v37 = vpop.f32.mrf.mxu0 }
 0x331   :  { %v2661_v38 = vpop.f32.mrf.mxu1  ;;  %v1734_v39 = vadd.f32 %v2613_v37, %v3261_v5 }
 0x332   :  { %v1927_v40 = vadd.f32 %v2661_v38, %v3261_v5  ;;  %v1725_v41 = vpop.f32.mrf.mxu0 }
 0x333   :  { %v1918_v42 = vpop.f32.mrf.mxu1  ;;  %1854 = vst.msk [vmem:[%s3589_s6 + $0x10] sm:$0xff] %vm178_vm1, %v1734_v39  ;;  %v1726_v43 = vadd.f32 %v3261_v5, %v1725_v41 }
 0x334   :  { %2047 = vst.msk [vmem:[%s3589_s6 + $0x110] sm:$0xff] %vm178_vm1, %v1927_v40  ;;  %v1919_v44 = vadd.f32 %v3261_v5, %v1918_v42  ;;  %v2614_v45 = vpop.f32.mrf.mxu0 }
 0x335   :  { %v2662_v46 = vpop.f32.mrf.mxu1  ;;  %1852 = vst.msk [vmem:[%s3589_s6] sm:$0xff] %vm178_vm1, %v1726_v43  ;;  %v1737_v48 = vadd.f32 %v2614_v45, %v3261_v5 }
 0x336   :  { %2045 = vst.msk [vmem:[%s3589_s6 + $0x100] sm:$0xff] %vm178_vm1, %v1919_v44  ;;  %v1930_v49 = vadd.f32 %v2662_v46, %v3261_v5  ;;  %v1728_v50 = vpop.f32.mrf.mxu0 }
 0x337   :  { %v1921_v51 = vpop.f32.mrf.mxu1  ;;  %1855 = vst.msk [vmem:[%s3589_s6 + $0x18] sm:$0xff] %vm178_vm1, %v1737_v48  ;;  %v1729_v52 = vadd.f32 %v3261_v5, %v1728_v50 }
 0x338   :  { %2048 = vst.msk [vmem:[%s3589_s6 + $0x118] sm:$0xff] %vm178_vm1, %v1930_v49  ;;  %v1922_v53 = vadd.f32 %v3261_v5, %v1921_v51  ;;  %v2617_v54 = vpop.f32.mrf.mxu0 }
 0x339   :  { %v2665_v55 = vpop.f32.mrf.mxu1  ;;  %1853 = vst.msk [vmem:[%s3589_s6 + $0x8] sm:$0xff] %vm178_vm1, %v1729_v52  ;;  %v1750_v56 = vadd.f32 %v2617_v54, %v3261_v5 }
 0x33a   :  { %2046 = vst.msk [vmem:[%s3589_s6 + $0x108] sm:$0xff] %vm178_vm1, %v1922_v53  ;;  %v1943_v57 = vadd.f32 %v2665_v55, %v3261_v5  ;;  %v1741_v58 = vpop.f32.mrf.mxu0 }
 0x33b   :  { %v1934_v59 = vpop.f32.mrf.mxu1  ;;  %1858 = vst.msk [vmem:[%s3589_s6 + $0x30] sm:$0xff] %vm178_vm1, %v1750_v56  ;;  %v1742_v60 = vadd.f32 %v3261_v5, %v1741_v58 }
 0x33c   :  { %2051 = vst.msk [vmem:[%s3589_s6 + $0x130] sm:$0xff] %vm178_vm1, %v1943_v57  ;;  %v1935_v61 = vadd.f32 %v3261_v5, %v1934_v59  ;;  %v2618_v62 = vpop.f32.mrf.mxu0 }
 0x33d   :  { %v2666_v63 = vpop.f32.mrf.mxu1  ;;  %1856 = vst.msk [vmem:[%s3589_s6 + $0x20] sm:$0xff] %vm178_vm1, %v1742_v60  ;;  %v1753_v0 = vadd.f32 %v2618_v62, %v3261_v5 }
 0x33e   :  { %2049 = vst.msk [vmem:[%s3589_s6 + $0x120] sm:$0xff] %vm178_vm1, %v1935_v61  ;;  %v1946_v26 = vadd.f32 %v2666_v63, %v3261_v5  ;;  %v1744_v1 = vpop.f32.mrf.mxu0 }
 0x33f   :  { %v1937_v2 = vpop.f32.mrf.mxu1  ;;  %1859 = vst.msk [vmem:[%s3589_s6 + $0x38] sm:$0xff] %vm178_vm1, %v1753_v0  ;;  %v1745_v3 = vadd.f32 %v3261_v5, %v1744_v1 }
 0x340   :  { %2052 = vst.msk [vmem:[%s3589_s6 + $0x138] sm:$0xff] %vm178_vm1, %v1946_v26  ;;  %v1938_v4 = vadd.f32 %v3261_v5, %v1937_v2  ;;  %v2621_v6 = vpop.f32.mrf.mxu0 }
 0x341   :  { %v2669_v7 = vpop.f32.mrf.mxu1  ;;  %1857 = vst.msk [vmem:[%s3589_s6 + $0x28] sm:$0xff] %vm178_vm1, %v1745_v3  ;;  %v1766_v8 = vadd.f32 %v2621_v6, %v3261_v5 }
 0x342   :  { %2050 = vst.msk [vmem:[%s3589_s6 + $0x128] sm:$0xff] %vm178_vm1, %v1938_v4  ;;  %v1959_v9 = vadd.f32 %v2669_v7, %v3261_v5  ;;  %v1757_v10 = vpop.f32.mrf.mxu0 }
 0x343   :  { %v1950_v11 = vpop.f32.mrf.mxu1  ;;  %1862 = vst.msk [vmem:[%s3589_s6 + $0x50] sm:$0xff] %vm178_vm1, %v1766_v8  ;;  %v1758_v12 = vadd.f32 %v3261_v5, %v1757_v10 }
 0x344   :  { %2055 = vst.msk [vmem:[%s3589_s6 + $0x150] sm:$0xff] %vm178_vm1, %v1959_v9  ;;  %v1951_v13 = vadd.f32 %v3261_v5, %v1950_v11  ;;  %v2622_v14 = vpop.f32.mrf.mxu0 }
 0x345   :  { %v2670_v15 = vpop.f32.mrf.mxu1  ;;  %1860 = vst.msk [vmem:[%s3589_s6 + $0x40] sm:$0xff] %vm178_vm1, %v1758_v12  ;;  %v1769_v16 = vadd.f32 %v2622_v14, %v3261_v5 }
 0x346   :  { %2053 = vst.msk [vmem:[%s3589_s6 + $0x140] sm:$0xff] %vm178_vm1, %v1951_v13  ;;  %v1962_v17 = vadd.f32 %v2670_v15, %v3261_v5  ;;  %v1760_v18 = vpop.f32.mrf.mxu0 }
 0x347   :  { %v1953_v19 = vpop.f32.mrf.mxu1  ;;  %1863 = vst.msk [vmem:[%s3589_s6 + $0x58] sm:$0xff] %vm178_vm1, %v1769_v16  ;;  %v1761_v20 = vadd.f32 %v3261_v5, %v1760_v18 }
 0x348   :  { %2056 = vst.msk [vmem:[%s3589_s6 + $0x158] sm:$0xff] %vm178_vm1, %v1962_v17  ;;  %v1954_v47 = vadd.f32 %v3261_v5, %v1953_v19  ;;  %v2625_v21 = vpop.f32.mrf.mxu0 }
 0x349   :  { %v2673_v22 = vpop.f32.mrf.mxu1  ;;  %1861 = vst.msk [vmem:[%s3589_s6 + $0x48] sm:$0xff] %vm178_vm1, %v1761_v20  ;;  %v1782_v23 = vadd.f32 %v2625_v21, %v3261_v5 }
 0x34a   :  { %2054 = vst.msk [vmem:[%s3589_s6 + $0x148] sm:$0xff] %vm178_vm1, %v1954_v47  ;;  %v1975_v24 = vadd.f32 %v2673_v22, %v3261_v5  ;;  %v1773_v25 = vpop.f32.mrf.mxu0 }
 0x34b   :  { %v1966_v27 = vpop.f32.mrf.mxu1  ;;  %1866 = vst.msk [vmem:[%s3589_s6 + $0x70] sm:$0xff] %vm178_vm1, %v1782_v23  ;;  %v1774_v28 = vadd.f32 %v3261_v5, %v1773_v25 }
 0x34c   :  { %2059 = vst.msk [vmem:[%s3589_s6 + $0x170] sm:$0xff] %vm178_vm1, %v1975_v24  ;;  %v1967_v29 = vadd.f32 %v3261_v5, %v1966_v27  ;;  %v2626_v30 = vpop.f32.mrf.mxu0 }
 0x34d   :  { %v2674_v31 = vpop.f32.mrf.mxu1  ;;  %1864 = vst.msk [vmem:[%s3589_s6 + $0x60] sm:$0xff] %vm178_vm1, %v1774_v28  ;;  %v1785_v32 = vadd.f32 %v2626_v30, %v3261_v5 }
 0x34e   :  { %2057 = vst.msk [vmem:[%s3589_s6 + $0x160] sm:$0xff] %vm178_vm1, %v1967_v29  ;;  %v1978_v33 = vadd.f32 %v2674_v31, %v3261_v5  ;;  %v1776_v34 = vpop.f32.mrf.mxu0 }
 0x34f   :  { %v1969_v35 = vpop.f32.mrf.mxu1  ;;  %1867 = vst.msk [vmem:[%s3589_s6 + $0x78] sm:$0xff] %vm178_vm1, %v1785_v32  ;;  %v1777_v36 = vadd.f32 %v3261_v5, %v1776_v34 }
 0x350   :  { %2060 = vst.msk [vmem:[%s3589_s6 + $0x178] sm:$0xff] %vm178_vm1, %v1978_v33  ;;  %v1970_v37 = vadd.f32 %v3261_v5, %v1969_v35  ;;  %v2629_v38 = vpop.f32.mrf.mxu0 }
 0x351   :  { %v2677_v39 = vpop.f32.mrf.mxu1  ;;  %1865 = vst.msk [vmem:[%s3589_s6 + $0x68] sm:$0xff] %vm178_vm1, %v1777_v36  ;;  %v1798_v40 = vadd.f32 %v2629_v38, %v3261_v5 }
 0x352   :  { %2058 = vst.msk [vmem:[%s3589_s6 + $0x168] sm:$0xff] %vm178_vm1, %v1970_v37  ;;  %v1991_v41 = vadd.f32 %v2677_v39, %v3261_v5  ;;  %v1789_v42 = vpop.f32.mrf.mxu0 }
 0x353   :  { %v1982_v43 = vpop.f32.mrf.mxu1  ;;  %1870 = vst.msk [vmem:[%s3589_s6 + $0x90] sm:$0xff] %vm178_vm1, %v1798_v40  ;;  %v1790_v44 = vadd.f32 %v3261_v5, %v1789_v42 }
 0x354   :  { %2063 = vst.msk [vmem:[%s3589_s6 + $0x190] sm:$0xff] %vm178_vm1, %v1991_v41  ;;  %v1983_v45 = vadd.f32 %v3261_v5, %v1982_v43  ;;  %v2630_v46 = vpop.f32.mrf.mxu0 }
 0x355   :  { %v2678_v48 = vpop.f32.mrf.mxu1  ;;  %1868 = vst.msk [vmem:[%s3589_s6 + $0x80] sm:$0xff] %vm178_vm1, %v1790_v44  ;;  %v1801_v49 = vadd.f32 %v2630_v46, %v3261_v5 }
 0x356   :  { %2061 = vst.msk [vmem:[%s3589_s6 + $0x180] sm:$0xff] %vm178_vm1, %v1983_v45  ;;  %v1994_v50 = vadd.f32 %v2678_v48, %v3261_v5  ;;  %v1792_v51 = vpop.f32.mrf.mxu0 }
 0x357   :  { %v1985_v52 = vpop.f32.mrf.mxu1  ;;  %1871 = vst.msk [vmem:[%s3589_s6 + $0x98] sm:$0xff] %vm178_vm1, %v1801_v49  ;;  %v1793_v53 = vadd.f32 %v3261_v5, %v1792_v51 }
 0x358   :  { %2064 = vst.msk [vmem:[%s3589_s6 + $0x198] sm:$0xff] %vm178_vm1, %v1994_v50  ;;  %v1986_v54 = vadd.f32 %v3261_v5, %v1985_v52  ;;  %v2633_v55 = vpop.f32.mrf.mxu0 }
 0x359   :  { %v2681_v56 = vpop.f32.mrf.mxu1  ;;  %1869 = vst.msk [vmem:[%s3589_s6 + $0x88] sm:$0xff] %vm178_vm1, %v1793_v53  ;;  %v1814_v57 = vadd.f32 %v2633_v55, %v3261_v5 }
 0x35a   :  { %2062 = vst.msk [vmem:[%s3589_s6 + $0x188] sm:$0xff] %vm178_vm1, %v1986_v54  ;;  %v2007_v58 = vadd.f32 %v2681_v56, %v3261_v5  ;;  %v1805_v59 = vpop.f32.mrf.mxu0 }
 0x35b   :  { %v1998_v60 = vpop.f32.mrf.mxu1  ;;  %1874 = vst.msk [vmem:[%s3589_s6 + $0xb0] sm:$0xff] %vm178_vm1, %v1814_v57  ;;  %v1806_v61 = vadd.f32 %v3261_v5, %v1805_v59 }
 0x35c   :  { %2067 = vst.msk [vmem:[%s3589_s6 + $0x1b0] sm:$0xff] %vm178_vm1, %v2007_v58  ;;  %v1999_v62 = vadd.f32 %v3261_v5, %v1998_v60  ;;  %v2634_v63 = vpop.f32.mrf.mxu0 }
 0x35d   :  { %v2682_v0 = vpop.f32.mrf.mxu1  ;;  %1872 = vst.msk [vmem:[%s3589_s6 + $0xa0] sm:$0xff] %vm178_vm1, %v1806_v61  ;;  %v1817_v26 = vadd.f32 %v2634_v63, %v3261_v5 }
 0x35e   :  { %2065 = vst.msk [vmem:[%s3589_s6 + $0x1a0] sm:$0xff] %vm178_vm1, %v1999_v62  ;;  %v2010_v1 = vadd.f32 %v2682_v0, %v3261_v5  ;;  %v1808_v2 = vpop.f32.mrf.mxu0 }
 0x35f   :  { %v2001_v3 = vpop.f32.mrf.mxu1  ;;  %1875 = vst.msk [vmem:[%s3589_s6 + $0xb8] sm:$0xff] %vm178_vm1, %v1817_v26  ;;  %v1809_v4 = vadd.f32 %v3261_v5, %v1808_v2 }
 0x360   :  { %2068 = vst.msk [vmem:[%s3589_s6 + $0x1b8] sm:$0xff] %vm178_vm1, %v2010_v1  ;;  %v2002_v6 = vadd.f32 %v3261_v5, %v2001_v3  ;;  %v2637_v7 = vpop.f32.mrf.mxu0 }
 0x361   :  { %v2685_v8 = vpop.f32.mrf.mxu1  ;;  %1873 = vst.msk [vmem:[%s3589_s6 + $0xa8] sm:$0xff] %vm178_vm1, %v1809_v4  ;;  %v1830_v9 = vadd.f32 %v2637_v7, %v3261_v5 }
 0x362   :  { %2066 = vst.msk [vmem:[%s3589_s6 + $0x1a8] sm:$0xff] %vm178_vm1, %v2002_v6  ;;  %v2023_v10 = vadd.f32 %v2685_v8, %v3261_v5  ;;  %v1821_v11 = vpop.f32.mrf.mxu0 }
 0x363   :  { %v2014_v12 = vpop.f32.mrf.mxu1  ;;  %1878 = vst.msk [vmem:[%s3589_s6 + $0xd0] sm:$0xff] %vm178_vm1, %v1830_v9  ;;  %v1822_v13 = vadd.f32 %v3261_v5, %v1821_v11 }
 0x364   :  { %2071 = vst.msk [vmem:[%s3589_s6 + $0x1d0] sm:$0xff] %vm178_vm1, %v2023_v10  ;;  %v2015_v14 = vadd.f32 %v3261_v5, %v2014_v12  ;;  %v2638_v15 = vpop.f32.mrf.mxu0 }
 0x365   :  { %v2686_v16 = vpop.f32.mrf.mxu1  ;;  %1876 = vst.msk [vmem:[%s3589_s6 + $0xc0] sm:$0xff] %vm178_vm1, %v1822_v13  ;;  %v1833_v17 = vadd.f32 %v2638_v15, %v3261_v5 }
 0x366   :  { %2069 = vst.msk [vmem:[%s3589_s6 + $0x1c0] sm:$0xff] %vm178_vm1, %v2015_v14  ;;  %v2026_v18 = vadd.f32 %v2686_v16, %v3261_v5  ;;  %v1824_v19 = vpop.f32.mrf.mxu0 }
 0x367   :  { %v2017_v20 = vpop.f32.mrf.mxu1  ;;  %1879 = vst.msk [vmem:[%s3589_s6 + $0xd8] sm:$0xff] %vm178_vm1, %v1833_v17  ;;  %v1825_v47 = vadd.f32 %v3261_v5, %v1824_v19 }
 0x368   :  { %2072 = vst.msk [vmem:[%s3589_s6 + $0x1d8] sm:$0xff] %vm178_vm1, %v2026_v18  ;;  %v2018_v21 = vadd.f32 %v3261_v5, %v2017_v20  ;;  %v2641_v22 = vpop.f32.mrf.mxu0 }
 0x369   :  { %v2689_v23 = vpop.f32.mrf.mxu1  ;;  %1877 = vst.msk [vmem:[%s3589_s6 + $0xc8] sm:$0xff] %vm178_vm1, %v1825_v47  ;;  %v1846_v24 = vadd.f32 %v2641_v22, %v3261_v5 }
 0x36a   :  { %2070 = vst.msk [vmem:[%s3589_s6 + $0x1c8] sm:$0xff] %vm178_vm1, %v2018_v21  ;;  %v2039_v25 = vadd.f32 %v2689_v23, %v3261_v5  ;;  %v1837_v27 = vpop.f32.mrf.mxu0 }
 0x36b   :  { %v2030_v28 = vpop.f32.mrf.mxu1  ;;  %1882 = vst.msk [vmem:[%s3589_s6 + $0xf0] sm:$0xff] %vm178_vm1, %v1846_v24  ;;  %v1838_v29 = vadd.f32 %v3261_v5, %v1837_v27 }
 0x36c   :  { %2075 = vst.msk [vmem:[%s3589_s6 + $0x1f0] sm:$0xff] %vm178_vm1, %v2039_v25  ;;  %v2031_v30 = vadd.f32 %v3261_v5, %v2030_v28  ;;  %v2642_v31 = vpop.f32.mrf.mxu0 }
 0x36d   :  { %v2690_v32 = vpop.f32.mrf.mxu1  ;;  %1880 = vst.msk [vmem:[%s3589_s6 + $0xe0] sm:$0xff] %vm178_vm1, %v1838_v29  ;;  %v1849_v33 = vadd.f32 %v2642_v31, %v3261_v5 }
 0x36e   :  { %2073 = vst.msk [vmem:[%s3589_s6 + $0x1e0] sm:$0xff] %vm178_vm1, %v2031_v30  ;;  %v2042_v34 = vadd.f32 %v2690_v32, %v3261_v5  ;;  %v1840_v35 = vpop.f32.mrf.mxu0 }
 0x36f   :  { %v2033_v36 = vpop.f32.mrf.mxu1  ;;  %1883 = vst.msk [vmem:[%s3589_s6 + $0xf8] sm:$0xff] %vm178_vm1, %v1849_v33  ;;  %v1841_v37 = vadd.f32 %v3261_v5, %v1840_v35 }
 0x370   :  { %2076 = vst.msk [vmem:[%s3589_s6 + $0x1f8] sm:$0xff] %vm178_vm1, %v2042_v34  ;;  %v2034_v38 = vadd.f32 %v3261_v5, %v2033_v36 }
 0x371   :  { %1881 = vst.msk [vmem:[%s3589_s6 + $0xe8] sm:$0xff] %vm178_vm1, %v1841_v37 }
 0x372   :  { %2074 = vst.msk [vmem:[%s3589_s6 + $0x1e8] sm:$0xff] %vm178_vm1, %v2034_v38 }

</bundles_post_ra>
